<compile_context>
chip_gen: v7x
topology: tpu7x:2x2x1
jax: 0.10.0
libtpu: 0.0.40
codegen_flags: <defaults>
</compile_context>

<pallas_src>
import numpy as np
import jax
import jax.numpy as jnp
from jax import lax
from jax.experimental import pallas as pl
from jax.experimental.pallas import tpu as pltpu


def lru_kernel(x_ref, h0_ref, lam_re_ref, lam_im_ref, bnT_re_ref, bnT_im_ref,
               cT_re_ref, cT_im_ref, d_ref,
               y_ref, hT_ref,
               hcar_re, hcar_im, u_re_sc, u_im_sc):
    t_blk = pl.program_id(0)
    n_rows = x_ref.shape[0]              # n_rows = TT * B (time-major flattened rows)
    B, d_hidden = hcar_re.shape
    TT = n_rows // B

    # Load the initial hidden state once, on the first time block.
    @pl.when(t_blk == 0)
    def _():
        hcar_re[...] = h0_ref[0]
        hcar_im[...] = h0_ref[1]

    x = x_ref[...]                                                    # (TT*B, d_model)

    # --- input projection: two small MXU pushes straight into re/im scratches ---
    # u_t = B_norm @ x_t  (complex), time-major rows, no lane slice / concat.
    u_re_sc[...] = jnp.dot(x, bnT_re_ref[...], preferred_element_type=jnp.float32)
    u_im_sc[...] = jnp.dot(x, bnT_im_ref[...], preferred_element_type=jnp.float32)

    lam_re = lam_re_ref[...]                                          # (1, d_hidden)
    lam_im = lam_im_ref[...]

    # Fold the carried hidden state into the first timestep: u_0 += lambda * h_carry.
    h_re0 = hcar_re[...]
    h_im0 = hcar_im[...]
    u_re_sc[pl.ds(0, B), :] = u_re_sc[pl.ds(0, B), :] + h_re0 * lam_re - h_im0 * lam_im
    u_im_sc[pl.ds(0, B), :] = u_im_sc[pl.ds(0, B), :] + h_re0 * lam_im + h_im0 * lam_re

    # --- log-depth Hillis-Steele scan over time within the block ---
    # After level k, a[t] = sum_{s > t - 2^(k+1)} lambda^(t-s) u[s]; after all levels a == h.
    a_re = u_re_sc[...]
    a_im = u_im_sc[...]
    row_ids = lax.broadcasted_iota(jnp.int32, (n_rows, d_hidden), 0)
    lp_re, lp_im = lam_re, lam_im                                     # lambda^(2^k)
    offset = 1
    while offset < TT:                   # static Python loop: ceil(log2(TT)) levels
        sh = offset * B
        r_re = pltpu.roll(a_re, shift=sh, axis=0)                     # a[t - offset] at row t
        r_im = pltpu.roll(a_im, shift=sh, axis=0)
        valid = row_ids >= sh                                         # zero the wrapped head
        r_re = jnp.where(valid, r_re, 0.0)
        r_im = jnp.where(valid, r_im, 0.0)
        a_re = a_re + r_re * lp_re - r_im * lp_im                     # a += lambda^offset * r
        a_im = a_im + r_re * lp_im + r_im * lp_re
        lp_re, lp_im = lp_re * lp_re - lp_im * lp_im, 2.0 * lp_re * lp_im
        offset *= 2

    # Carry the hidden state at the block's last timestep across grid steps.
    hcar_re[...] = a_re[n_rows - B:, :]
    hcar_im[...] = a_im[n_rows - B:, :]

    # --- output projection + D*x: two MXU pushes, one lane-dense slab store per block ---
    # y = Re[C h] + D*x = h_re @ C_re^T - h_im @ C_im^T + D*x
    y_ref[...] = (jnp.dot(a_re, cT_re_ref[...], preferred_element_type=jnp.float32)
                  - jnp.dot(a_im, cT_im_ref[...], preferred_element_type=jnp.float32)
                  + x * d_ref[...])

    # Final hidden state: written only once, on the last time block.
    @pl.when(t_blk == pl.num_programs(0) - 1)
    def _():
        hT_ref[0] = hcar_re[...]
        hT_ref[1] = hcar_im[...]


def _pick_time_block(T, B, d_model, d_hidden, budget_bytes=16 << 20):
    """Largest divisor of T whose time block fits a conservative VMEM budget."""
    valid = [d for d in range(1, T + 1)
             if T % d == 0 and ((d * B) % 8 == 0 or d == T)]

    def blk_bytes(d):
        rows = d * B
        # x + y double-buffered blocks, two hist scratches + scan temporaries.
        return 4 * rows * (4 * d_model + 8 * d_hidden)

    fitting = [d for d in valid if blk_bytes(d) <= budget_bytes]
    return max(fitting) if fitting else min(valid)


def lru_forward(inputs, h0, lam_re, lam_im, bnT_re, bnT_im, cT_re, cT_im, D2,
                *, time_block=None):
    """inputs: (T, B, d_model) f32; h0: (2, B, d_hidden) stacked [re, im].
    Returns (y (T,B,d_model), hT (2,B,d_hidden))."""
    T, B, d_model = inputs.shape
    d_hidden = lam_re.shape[-1]

    if time_block is None:
        time_block = _pick_time_block(T, B, d_model, d_hidden)
    TT = time_block
    assert T % TT == 0, "time_block must divide T"
    assert (TT * B) % 8 == 0 or TT == T, "row block must be sublane aligned"
    nt = T // TT

    # Free row-major flattening: time-major rows, row index = t*B + b.
    x2d = inputs.reshape(T * B, d_model)

    def const_spec(shape):
        zeros = (0,) * len(shape)
        return pl.BlockSpec(shape, lambda t: zeros)

    grid_spec = pltpu.PrefetchScalarGridSpec(
        num_scalar_prefetch=0,
        grid=(nt,),
        in_specs=[
            pl.BlockSpec((TT * B, d_model), lambda t: (t, 0)),   # x slab for TT steps
            const_spec((2, B, d_hidden)),                        # h0 (re, im)
            const_spec((1, d_hidden)),                           # lambda re
            const_spec((1, d_hidden)),                           # lambda im
            const_spec((d_model, d_hidden)),                     # (gamma*B_re)^T
            const_spec((d_model, d_hidden)),                     # (gamma*B_im)^T
            const_spec((d_hidden, d_model)),                     # C_re^T
            const_spec((d_hidden, d_model)),                     # C_im^T
            const_spec((1, d_model)),                            # D
        ],
        out_specs=[
            pl.BlockSpec((TT * B, d_model), lambda t: (t, 0)),   # y slab
            const_spec((2, B, d_hidden)),                        # final hidden (re, im)
        ],
        scratch_shapes=[
            pltpu.VMEM((B, d_hidden), jnp.float32),              # carried h re
            pltpu.VMEM((B, d_hidden), jnp.float32),              # carried h im
            pltpu.VMEM((TT * B, d_hidden), jnp.float32),         # per-block u / hist re
            pltpu.VMEM((TT * B, d_hidden), jnp.float32),         # per-block u / hist im
        ],
    )

    y2d, hT = pl.pallas_call(
        lru_kernel,
        out_shape=(
            jax.ShapeDtypeStruct((T * B, d_model), jnp.float32),
            jax.ShapeDtypeStruct((2, B, d_hidden), jnp.float32),
        ),
        grid_spec=grid_spec,
        compiler_params=pltpu.CompilerParams(
            dimension_semantics=("arbitrary",),      # sequential scan over time blocks
            vmem_limit_bytes=32 * 1024 * 1024,       # explicit (v5e default is only 16MiB)
        ),
    )(x2d, h0, lam_re, lam_im, bnT_re, bnT_im, cT_re, cT_im, D2)

    return y2d.reshape(T, B, d_model), hT


if __name__ == "__main__":
    key = jax.random.PRNGKey(0)
    d_hidden, d_model = 32, 16
    T, B = 64, 2
    r_min, r_max, max_phase = 0.0, 1.0, 6.28

    keys = jax.random.split(key, 10)

    # Deterministic parameter init mirroring the PyTorch __init__ (shapes & distributions).
    u_theta = jax.random.uniform(keys[0], (d_hidden,), dtype=jnp.float32)
    theta_log = jnp.log(max_phase * u_theta)
    u_nu = jax.random.uniform(keys[1], (d_hidden,), dtype=jnp.float32)
    nu_log = jnp.log(-0.5 * jnp.log(u_nu * (r_max ** 2 - r_min ** 2) + r_min ** 2))
    # |exp(-exp(nu) + i exp(theta))|^2 = exp(-2 exp(nu))
    gamma_log = 0.5 * jnp.log(1.0 - jnp.exp(-2.0 * jnp.exp(nu_log)))
    B_re = jax.random.normal(keys[2], (d_hidden, d_model), dtype=jnp.float32) / np.sqrt(2 * d_model)
    B_im = jax.random.normal(keys[3], (d_hidden, d_model), dtype=jnp.float32) / np.sqrt(2 * d_model)
    C_re = jax.random.normal(keys[4], (d_model, d_hidden), dtype=jnp.float32) / np.sqrt(d_hidden)
    C_im = jax.random.normal(keys[5], (d_model, d_hidden), dtype=jnp.float32) / np.sqrt(d_hidden)
    D = jax.random.normal(keys[6], (d_model,), dtype=jnp.float32)

    inputs = jax.random.normal(keys[7], (T, B, d_model), dtype=jnp.float32)
    h0_re = 0.1 * jax.random.normal(keys[8], (B, d_hidden), dtype=jnp.float32)
    h0_im = 0.1 * jax.random.normal(keys[9], (B, d_hidden), dtype=jnp.float32)
    h0 = jnp.stack([h0_re, h0_im], axis=0)                          # (2, B, d_hidden)

    # --- glue: real/imag decomposition of the complex parameters ---
    lam_mod = jnp.exp(-jnp.exp(nu_log))
    lam_re = (lam_mod * jnp.cos(jnp.exp(theta_log)))[None, :]        # (1, d_hidden)
    lam_im = (lam_mod * jnp.sin(jnp.exp(theta_log)))[None, :]
    gamma = jnp.exp(gamma_log)[:, None]
    bnT_re = (B_re * gamma).T                                        # (d_model, d_hidden)
    bnT_im = (B_im * gamma).T
    cT_re = C_re.T                                                   # (d_hidden, d_model)
    cT_im = C_im.T
    D2 = D[None, :]                                                  # (1, d_model)

    y, hT = jax.block_until_ready(
        lru_forward(inputs, h0, lam_re, lam_im, bnT_re, bnT_im, cT_re, cT_im, D2))
    hT_re, hT_im = np.asarray(hT[0]), np.asarray(hT[1])
    y_np = np.asarray(y)

    # --- pure-NumPy complex reference (mirrors the PyTorch forward exactly) ---
    nu_n = np.asarray(nu_log); theta_n = np.asarray(theta_log); gamma_n = np.asarray(gamma_log)
    diag_lambda = np.exp(-np.exp(nu_n) + 1j * np.exp(theta_n))
    B_norm = (np.asarray(B_re) + 1j * np.asarray(B_im)) * np.exp(gamma_n)[:, None]
    C = np.asarray(C_re) + 1j * np.asarray(C_im)
    D_n = np.asarray(D)
    x_n = np.asarray(inputs)
    h = (np.asarray(h0_re) + 1j * np.asarray(h0_im)).astype(np.complex64)
    ys = []
    for t in range(T):
        x_t = x_n[t]
        h = h * diag_lambda + x_t @ B_norm.T
        ys.append((h @ C.T).real + D_n * x_t)
    y_ref = np.stack(ys)

    assert np.allclose(y_np, y_ref, atol=1e-3, rtol=1e-3), "output mismatch"
    assert np.allclose(hT_re, h.real, atol=1e-3, rtol=1e-3), "hidden (re) mismatch"
    assert np.allclose(hT_im, h.imag, atol=1e-3, rtol=1e-3), "hidden (im) mismatch"
    print("KERNEL_OK")
</pallas_src>

<mosaic_0001>
module attributes {stable_mosaic.version = 11 : i64} {
  func.func @lru_kernel(%arg0: i32, %arg1: memref<128x16xf32, #tpu.memory_space<vmem>>, %arg2: memref<2x2x32xf32, #tpu.memory_space<vmem>>, %arg3: memref<1x32xf32, #tpu.memory_space<vmem>>, %arg4: memref<1x32xf32, #tpu.memory_space<vmem>>, %arg5: memref<16x32xf32, #tpu.memory_space<vmem>>, %arg6: memref<16x32xf32, #tpu.memory_space<vmem>>, %arg7: memref<32x16xf32, #tpu.memory_space<vmem>>, %arg8: memref<32x16xf32, #tpu.memory_space<vmem>>, %arg9: memref<1x16xf32, #tpu.memory_space<vmem>>, %arg10: memref<128x16xf32, #tpu.memory_space<vmem>>, %arg11: memref<2x2x32xf32, #tpu.memory_space<vmem>>, %arg12: memref<2x32xf32, #tpu.memory_space<vmem>>, %arg13: memref<2x32xf32, #tpu.memory_space<vmem>>, %arg14: memref<128x32xf32, #tpu.memory_space<vmem>>, %arg15: memref<128x32xf32, #tpu.memory_space<vmem>>) attributes {dimension_semantics = [#tpu.dimension_semantics<arbitrary>], iteration_bounds = array<i64: 1>, scalar_prefetch = 0 : i64, scratch_operands = 4 : i64, tpu.core_type = #tpu.core_type<tc>, window_params = [{transform_indices = @transform_0, window_bounds = array<i64: 128, 16>}, {pipeline_mode = #tpu.pipeline_mode<synchronous>, transform_indices = @transform_1, window_bounds = array<i64: 2, 2, 32>}, {pipeline_mode = #tpu.pipeline_mode<synchronous>, transform_indices = @transform_2, window_bounds = array<i64: 1, 32>}, {pipeline_mode = #tpu.pipeline_mode<synchronous>, transform_indices = @transform_3, window_bounds = array<i64: 1, 32>}, {pipeline_mode = #tpu.pipeline_mode<synchronous>, transform_indices = @transform_4, window_bounds = array<i64: 16, 32>}, {pipeline_mode = #tpu.pipeline_mode<synchronous>, transform_indices = @transform_5, window_bounds = array<i64: 16, 32>}, {pipeline_mode = #tpu.pipeline_mode<synchronous>, transform_indices = @transform_6, window_bounds = array<i64: 32, 16>}, {pipeline_mode = #tpu.pipeline_mode<synchronous>, transform_indices = @transform_7, window_bounds = array<i64: 32, 16>}, {pipeline_mode = #tpu.pipeline_mode<synchronous>, transform_indices = @transform_8, window_bounds = array<i64: 1, 16>}, {transform_indices = @transform_9, window_bounds = array<i64: 128, 16>}, {pipeline_mode = #tpu.pipeline_mode<synchronous>, transform_indices = @transform_10, window_bounds = array<i64: 2, 2, 32>}]} {
    %c0_i32 = arith.constant 0 : i32
    %0 = arith.cmpi eq, %arg0, %c0_i32 : i32
    %1 = arith.extui %0 : i1 to i32
    %c0_i32_0 = arith.constant 0 : i32
    %2 = arith.cmpi ne, %1, %c0_i32_0 : i32
    scf.if %2 {
      %c0_76 = arith.constant 0 : index
      %c0_77 = arith.constant 0 : index
      %c0_78 = arith.constant 0 : index
      %200 = vector.load %arg2[%c0_76, %c0_77, %c0_78] : memref<2x2x32xf32, #tpu.memory_space<vmem>>, vector<1x2x32xf32>
      %201 = vector.shape_cast %200 : vector<1x2x32xf32> to vector<2x32xf32>
      %c0_79 = arith.constant 0 : index
      %c0_80 = arith.constant 0 : index
      %202 = vector.load %arg12[%c0_79, %c0_80] : memref<2x32xf32, #tpu.memory_space<vmem>>, vector<2x32xf32>
      tpu.vector_store %arg12[%c0_79, %c0_80], %201 {strides = array<i32>} : memref<2x32xf32, #tpu.memory_space<vmem>>, vector<2x32xf32>,
      %c1 = arith.constant 1 : index
      %c0_81 = arith.constant 0 : index
      %c0_82 = arith.constant 0 : index
      %203 = vector.load %arg2[%c1, %c0_81, %c0_82] : memref<2x2x32xf32, #tpu.memory_space<vmem>>, vector<1x2x32xf32>
      %204 = vector.shape_cast %203 : vector<1x2x32xf32> to vector<2x32xf32>
      %c0_83 = arith.constant 0 : index
      %c0_84 = arith.constant 0 : index
      %205 = vector.load %arg13[%c0_83, %c0_84] : memref<2x32xf32, #tpu.memory_space<vmem>>, vector<2x32xf32>
      tpu.vector_store %arg13[%c0_83, %c0_84], %204 {strides = array<i32>} : memref<2x32xf32, #tpu.memory_space<vmem>>, vector<2x32xf32>,
    } else {
    }
    %c0 = arith.constant 0 : index
    %c0_1 = arith.constant 0 : index
    %3 = vector.load %arg1[%c0, %c0_1] : memref<128x16xf32, #tpu.memory_space<vmem>>, vector<128x16xf32>
    %c0_2 = arith.constant 0 : index
    %c0_3 = arith.constant 0 : index
    %4 = vector.load %arg5[%c0_2, %c0_3] : memref<16x32xf32, #tpu.memory_space<vmem>>, vector<16x32xf32>
    %cst = arith.constant dense<0.000000e+00> : vector<128x32xf32>
    %5 = tpu.matmul %3, %4, %cst {dimension_numbers = #tpu.dot_dimension_numbers<[1], [0], [0], [1], [0, 0, 1, 1], [], []>} : vector<128x16xf32>, vector<16x32xf32>, vector<128x32xf32> -> vector<128x32xf32>
    %c0_4 = arith.constant 0 : index
    %c0_5 = arith.constant 0 : index
    %6 = vector.load %arg14[%c0_4, %c0_5] : memref<128x32xf32, #tpu.memory_space<vmem>>, vector<128x32xf32>
    tpu.vector_store %arg14[%c0_4, %c0_5], %5 {strides = array<i32>} : memref<128x32xf32, #tpu.memory_space<vmem>>, vector<128x32xf32>,
    %c0_6 = arith.constant 0 : index
    %c0_7 = arith.constant 0 : index
    %7 = vector.load %arg6[%c0_6, %c0_7] : memref<16x32xf32, #tpu.memory_space<vmem>>, vector<16x32xf32>
    %cst_8 = arith.constant dense<0.000000e+00> : vector<128x32xf32>
    %8 = tpu.matmul %3, %7, %cst_8 {dimension_numbers = #tpu.dot_dimension_numbers<[1], [0], [0], [1], [0, 0, 1, 1], [], []>} : vector<128x16xf32>, vector<16x32xf32>, vector<128x32xf32> -> vector<128x32xf32>
    %c0_9 = arith.constant 0 : index
    %c0_10 = arith.constant 0 : index
    %9 = vector.load %arg15[%c0_9, %c0_10] : memref<128x32xf32, #tpu.memory_space<vmem>>, vector<128x32xf32>
    tpu.vector_store %arg15[%c0_9, %c0_10], %8 {strides = array<i32>} : memref<128x32xf32, #tpu.memory_space<vmem>>, vector<128x32xf32>,
    %c0_11 = arith.constant 0 : index
    %c0_12 = arith.constant 0 : index
    %10 = vector.load %arg3[%c0_11, %c0_12] : memref<1x32xf32, #tpu.memory_space<vmem>>, vector<1x32xf32>
    %c0_13 = arith.constant 0 : index
    %c0_14 = arith.constant 0 : index
    %11 = vector.load %arg4[%c0_13, %c0_14] : memref<1x32xf32, #tpu.memory_space<vmem>>, vector<1x32xf32>
    %c0_15 = arith.constant 0 : index
    %c0_16 = arith.constant 0 : index
    %12 = vector.load %arg12[%c0_15, %c0_16] : memref<2x32xf32, #tpu.memory_space<vmem>>, vector<2x32xf32>
    %c0_17 = arith.constant 0 : index
    %c0_18 = arith.constant 0 : index
    %13 = vector.load %arg13[%c0_17, %c0_18] : memref<2x32xf32, #tpu.memory_space<vmem>>, vector<2x32xf32>
    %c0_19 = arith.constant 0 : index
    %c0_20 = arith.constant 0 : index
    %14 = vector.load %arg14[%c0_19, %c0_20] : memref<128x32xf32, #tpu.memory_space<vmem>>, vector<2x32xf32>
    %15 = vector.broadcast %10 : vector<1x32xf32> to vector<2x32xf32>
    %16 = arith.mulf %12, %15 : vector<2x32xf32>
    %17 = arith.addf %14, %16 : vector<2x32xf32>
    %18 = vector.broadcast %11 : vector<1x32xf32> to vector<2x32xf32>
    %19 = arith.mulf %13, %18 : vector<2x32xf32>
    %20 = arith.subf %17, %19 : vector<2x32xf32>
    %c0_21 = arith.constant 0 : index
    %c0_22 = arith.constant 0 : index
    %21 = vector.load %arg14[%c0_21, %c0_22] : memref<128x32xf32, #tpu.memory_space<vmem>>, vector<2x32xf32>
    tpu.vector_store %arg14[%c0_21, %c0_22], %20 {strides = array<i32>} : memref<128x32xf32, #tpu.memory_space<vmem>>, vector<2x32xf32>,
    %c0_23 = arith.constant 0 : index
    %c0_24 = arith.constant 0 : index
    %22 = vector.load %arg15[%c0_23, %c0_24] : memref<128x32xf32, #tpu.memory_space<vmem>>, vector<2x32xf32>
    %23 = vector.broadcast %11 : vector<1x32xf32> to vector<2x32xf32>
    %24 = arith.mulf %12, %23 : vector<2x32xf32>
    %25 = arith.addf %22, %24 : vector<2x32xf32>
    %26 = vector.broadcast %10 : vector<1x32xf32> to vector<2x32xf32>
    %27 = arith.mulf %13, %26 : vector<2x32xf32>
    %28 = arith.addf %25, %27 : vector<2x32xf32>
    %c0_25 = arith.constant 0 : index
    %c0_26 = arith.constant 0 : index
    %29 = vector.load %arg15[%c0_25, %c0_26] : memref<128x32xf32, #tpu.memory_space<vmem>>, vector<2x32xf32>
    tpu.vector_store %arg15[%c0_25, %c0_26], %28 {strides = array<i32>} : memref<128x32xf32, #tpu.memory_space<vmem>>, vector<2x32xf32>,
    %c0_27 = arith.constant 0 : index
    %c0_28 = arith.constant 0 : index
    %30 = vector.load %arg14[%c0_27, %c0_28] : memref<128x32xf32, #tpu.memory_space<vmem>>, vector<128x32xf32>
    %c0_29 = arith.constant 0 : index
    %c0_30 = arith.constant 0 : index
    %31 = vector.load %arg15[%c0_29, %c0_30] : memref<128x32xf32, #tpu.memory_space<vmem>>, vector<128x32xf32>
    %32 = tpu.iota {dimensions = array<i32: 0>} : vector<128x32xi32>
    %c2_i32 = arith.constant 2 : i32
    %33 = tpu.dynamic_rotate %30 by %c2_i32 dim 0 : vector<128x32xf32>, i32 -> vector<128x32xf32>
    %c2_i32_31 = arith.constant 2 : i32
    %34 = tpu.dynamic_rotate %31 by %c2_i32_31 dim 0 : vector<128x32xf32>, i32 -> vector<128x32xf32>
    %c2_i32_32 = arith.constant 2 : i32
    %35 = vector.broadcast %c2_i32_32 : i32 to vector<128x32xi32>
    %36 = arith.cmpi sge, %32, %35 : vector<128x32xi32>
    %cst_33 = arith.constant 0.000000e+00 : f32
    %37 = vector.broadcast %cst_33 : f32 to vector<128x32xf32>
    %38 = arith.select %36, %33, %37 : vector<128x32xi1>, vector<128x32xf32>
    %cst_34 = arith.constant 0.000000e+00 : f32
    %39 = vector.broadcast %cst_34 : f32 to vector<128x32xf32>
    %40 = arith.select %36, %34, %39 : vector<128x32xi1>, vector<128x32xf32>
    %41 = vector.broadcast %10 : vector<1x32xf32> to vector<128x32xf32>
    %42 = arith.mulf %38, %41 : vector<128x32xf32>
    %43 = arith.addf %30, %42 : vector<128x32xf32>
    %44 = vector.broadcast %11 : vector<1x32xf32> to vector<128x32xf32>
    %45 = arith.mulf %40, %44 : vector<128x32xf32>
    %46 = arith.subf %43, %45 : vector<128x32xf32>
    %47 = vector.broadcast %11 : vector<1x32xf32> to vector<128x32xf32>
    %48 = arith.mulf %38, %47 : vector<128x32xf32>
    %49 = arith.addf %31, %48 : vector<128x32xf32>
    %50 = vector.broadcast %10 : vector<1x32xf32> to vector<128x32xf32>
    %51 = arith.mulf %40, %50 : vector<128x32xf32>
    %52 = arith.addf %49, %51 : vector<128x32xf32>
    %53 = arith.mulf %10, %10 : vector<1x32xf32>
    %54 = arith.mulf %11, %11 : vector<1x32xf32>
    %55 = arith.subf %53, %54 : vector<1x32xf32>
    %cst_35 = arith.constant 2.000000e+00 : f32
    %56 = vector.broadcast %cst_35 : f32 to vector<1x32xf32>
    %57 = arith.mulf %56, %10 : vector<1x32xf32>
    %58 = arith.mulf %57, %11 : vector<1x32xf32>
    %c4_i32 = arith.constant 4 : i32
    %59 = tpu.dynamic_rotate %46 by %c4_i32 dim 0 : vector<128x32xf32>, i32 -> vector<128x32xf32>
    %c4_i32_36 = arith.constant 4 : i32
    %60 = tpu.dynamic_rotate %52 by %c4_i32_36 dim 0 : vector<128x32xf32>, i32 -> vector<128x32xf32>
    %c4_i32_37 = arith.constant 4 : i32
    %61 = vector.broadcast %c4_i32_37 : i32 to vector<128x32xi32>
    %62 = arith.cmpi sge, %32, %61 : vector<128x32xi32>
    %cst_38 = arith.constant 0.000000e+00 : f32
    %63 = vector.broadcast %cst_38 : f32 to vector<128x32xf32>
    %64 = arith.select %62, %59, %63 : vector<128x32xi1>, vector<128x32xf32>
    %cst_39 = arith.constant 0.000000e+00 : f32
    %65 = vector.broadcast %cst_39 : f32 to vector<128x32xf32>
    %66 = arith.select %62, %60, %65 : vector<128x32xi1>, vector<128x32xf32>
    %67 = vector.broadcast %55 : vector<1x32xf32> to vector<128x32xf32>
    %68 = arith.mulf %64, %67 : vector<128x32xf32>
    %69 = arith.addf %46, %68 : vector<128x32xf32>
    %70 = vector.broadcast %58 : vector<1x32xf32> to vector<128x32xf32>
    %71 = arith.mulf %66, %70 : vector<128x32xf32>
    %72 = arith.subf %69, %71 : vector<128x32xf32>
    %73 = vector.broadcast %58 : vector<1x32xf32> to vector<128x32xf32>
    %74 = arith.mulf %64, %73 : vector<128x32xf32>
    %75 = arith.addf %52, %74 : vector<128x32xf32>
    %76 = vector.broadcast %55 : vector<1x32xf32> to vector<128x32xf32>
    %77 = arith.mulf %66, %76 : vector<128x32xf32>
    %78 = arith.addf %75, %77 : vector<128x32xf32>
    %79 = arith.mulf %55, %55 : vector<1x32xf32>
    %80 = arith.mulf %58, %58 : vector<1x32xf32>
    %81 = arith.subf %79, %80 : vector<1x32xf32>
    %cst_40 = arith.constant 2.000000e+00 : f32
    %82 = vector.broadcast %cst_40 : f32 to vector<1x32xf32>
    %83 = arith.mulf %82, %55 : vector<1x32xf32>
    %84 = arith.mulf %83, %58 : vector<1x32xf32>
    %c8_i32 = arith.constant 8 : i32
    %85 = tpu.dynamic_rotate %72 by %c8_i32 dim 0 : vector<128x32xf32>, i32 -> vector<128x32xf32>
    %c8_i32_41 = arith.constant 8 : i32
    %86 = tpu.dynamic_rotate %78 by %c8_i32_41 dim 0 : vector<128x32xf32>, i32 -> vector<128x32xf32>
    %c8_i32_42 = arith.constant 8 : i32
    %87 = vector.broadcast %c8_i32_42 : i32 to vector<128x32xi32>
    %88 = arith.cmpi sge, %32, %87 : vector<128x32xi32>
    %cst_43 = arith.constant 0.000000e+00 : f32
    %89 = vector.broadcast %cst_43 : f32 to vector<128x32xf32>
    %90 = arith.select %88, %85, %89 : vector<128x32xi1>, vector<128x32xf32>
    %cst_44 = arith.constant 0.000000e+00 : f32
    %91 = vector.broadcast %cst_44 : f32 to vector<128x32xf32>
    %92 = arith.select %88, %86, %91 : vector<128x32xi1>, vector<128x32xf32>
    %93 = vector.broadcast %81 : vector<1x32xf32> to vector<128x32xf32>
    %94 = arith.mulf %90, %93 : vector<128x32xf32>
    %95 = arith.addf %72, %94 : vector<128x32xf32>
    %96 = vector.broadcast %84 : vector<1x32xf32> to vector<128x32xf32>
    %97 = arith.mulf %92, %96 : vector<128x32xf32>
    %98 = arith.subf %95, %97 : vector<128x32xf32>
    %99 = vector.broadcast %84 : vector<1x32xf32> to vector<128x32xf32>
    %100 = arith.mulf %90, %99 : vector<128x32xf32>
    %101 = arith.addf %78, %100 : vector<128x32xf32>
    %102 = vector.broadcast %81 : vector<1x32xf32> to vector<128x32xf32>
    %103 = arith.mulf %92, %102 : vector<128x32xf32>
    %104 = arith.addf %101, %103 : vector<128x32xf32>
    %105 = arith.mulf %81, %81 : vector<1x32xf32>
    %106 = arith.mulf %84, %84 : vector<1x32xf32>
    %107 = arith.subf %105, %106 : vector<1x32xf32>
    %cst_45 = arith.constant 2.000000e+00 : f32
    %108 = vector.broadcast %cst_45 : f32 to vector<1x32xf32>
    %109 = arith.mulf %108, %81 : vector<1x32xf32>
    %110 = arith.mulf %109, %84 : vector<1x32xf32>
    %c16_i32 = arith.constant 16 : i32
    %111 = tpu.dynamic_rotate %98 by %c16_i32 dim 0 : vector<128x32xf32>, i32 -> vector<128x32xf32>
    %c16_i32_46 = arith.constant 16 : i32
    %112 = tpu.dynamic_rotate %104 by %c16_i32_46 dim 0 : vector<128x32xf32>, i32 -> vector<128x32xf32>
    %c16_i32_47 = arith.constant 16 : i32
    %113 = vector.broadcast %c16_i32_47 : i32 to vector<128x32xi32>
    %114 = arith.cmpi sge, %32, %113 : vector<128x32xi32>
    %cst_48 = arith.constant 0.000000e+00 : f32
    %115 = vector.broadcast %cst_48 : f32 to vector<128x32xf32>
    %116 = arith.select %114, %111, %115 : vector<128x32xi1>, vector<128x32xf32>
    %cst_49 = arith.constant 0.000000e+00 : f32
    %117 = vector.broadcast %cst_49 : f32 to vector<128x32xf32>
    %118 = arith.select %114, %112, %117 : vector<128x32xi1>, vector<128x32xf32>
    %119 = vector.broadcast %107 : vector<1x32xf32> to vector<128x32xf32>
    %120 = arith.mulf %116, %119 : vector<128x32xf32>
    %121 = arith.addf %98, %120 : vector<128x32xf32>
    %122 = vector.broadcast %110 : vector<1x32xf32> to vector<128x32xf32>
    %123 = arith.mulf %118, %122 : vector<128x32xf32>
    %124 = arith.subf %121, %123 : vector<128x32xf32>
    %125 = vector.broadcast %110 : vector<1x32xf32> to vector<128x32xf32>
    %126 = arith.mulf %116, %125 : vector<128x32xf32>
    %127 = arith.addf %104, %126 : vector<128x32xf32>
    %128 = vector.broadcast %107 : vector<1x32xf32> to vector<128x32xf32>
    %129 = arith.mulf %118, %128 : vector<128x32xf32>
    %130 = arith.addf %127, %129 : vector<128x32xf32>
    %131 = arith.mulf %107, %107 : vector<1x32xf32>
    %132 = arith.mulf %110, %110 : vector<1x32xf32>
    %133 = arith.subf %131, %132 : vector<1x32xf32>
    %cst_50 = arith.constant 2.000000e+00 : f32
    %134 = vector.broadcast %cst_50 : f32 to vector<1x32xf32>
    %135 = arith.mulf %134, %107 : vector<1x32xf32>
    %136 = arith.mulf %135, %110 : vector<1x32xf32>
    %c32_i32 = arith.constant 32 : i32
    %137 = tpu.dynamic_rotate %124 by %c32_i32 dim 0 : vector<128x32xf32>, i32 -> vector<128x32xf32>
    %c32_i32_51 = arith.constant 32 : i32
    %138 = tpu.dynamic_rotate %130 by %c32_i32_51 dim 0 : vector<128x32xf32>, i32 -> vector<128x32xf32>
    %c32_i32_52 = arith.constant 32 : i32
    %139 = vector.broadcast %c32_i32_52 : i32 to vector<128x32xi32>
    %140 = arith.cmpi sge, %32, %139 : vector<128x32xi32>
    %cst_53 = arith.constant 0.000000e+00 : f32
    %141 = vector.broadcast %cst_53 : f32 to vector<128x32xf32>
    %142 = arith.select %140, %137, %141 : vector<128x32xi1>, vector<128x32xf32>
    %cst_54 = arith.constant 0.000000e+00 : f32
    %143 = vector.broadcast %cst_54 : f32 to vector<128x32xf32>
    %144 = arith.select %140, %138, %143 : vector<128x32xi1>, vector<128x32xf32>
    %145 = vector.broadcast %133 : vector<1x32xf32> to vector<128x32xf32>
    %146 = arith.mulf %142, %145 : vector<128x32xf32>
    %147 = arith.addf %124, %146 : vector<128x32xf32>
    %148 = vector.broadcast %136 : vector<1x32xf32> to vector<128x32xf32>
    %149 = arith.mulf %144, %148 : vector<128x32xf32>
    %150 = arith.subf %147, %149 : vector<128x32xf32>
    %151 = vector.broadcast %136 : vector<1x32xf32> to vector<128x32xf32>
    %152 = arith.mulf %142, %151 : vector<128x32xf32>
    %153 = arith.addf %130, %152 : vector<128x32xf32>
    %154 = vector.broadcast %133 : vector<1x32xf32> to vector<128x32xf32>
    %155 = arith.mulf %144, %154 : vector<128x32xf32>
    %156 = arith.addf %153, %155 : vector<128x32xf32>
    %157 = arith.mulf %133, %133 : vector<1x32xf32>
    %158 = arith.mulf %136, %136 : vector<1x32xf32>
    %159 = arith.subf %157, %158 : vector<1x32xf32>
    %cst_55 = arith.constant 2.000000e+00 : f32
    %160 = vector.broadcast %cst_55 : f32 to vector<1x32xf32>
    %161 = arith.mulf %160, %133 : vector<1x32xf32>
    %162 = arith.mulf %161, %136 : vector<1x32xf32>
    %c64_i32 = arith.constant 64 : i32
    %163 = tpu.dynamic_rotate %150 by %c64_i32 dim 0 : vector<128x32xf32>, i32 -> vector<128x32xf32>
    %c64_i32_56 = arith.constant 64 : i32
    %164 = tpu.dynamic_rotate %156 by %c64_i32_56 dim 0 : vector<128x32xf32>, i32 -> vector<128x32xf32>
    %c64_i32_57 = arith.constant 64 : i32
    %165 = vector.broadcast %c64_i32_57 : i32 to vector<128x32xi32>
    %166 = arith.cmpi sge, %32, %165 : vector<128x32xi32>
    %cst_58 = arith.constant 0.000000e+00 : f32
    %167 = vector.broadcast %cst_58 : f32 to vector<128x32xf32>
    %168 = arith.select %166, %163, %167 : vector<128x32xi1>, vector<128x32xf32>
    %cst_59 = arith.constant 0.000000e+00 : f32
    %169 = vector.broadcast %cst_59 : f32 to vector<128x32xf32>
    %170 = arith.select %166, %164, %169 : vector<128x32xi1>, vector<128x32xf32>
    %171 = vector.broadcast %159 : vector<1x32xf32> to vector<128x32xf32>
    %172 = arith.mulf %168, %171 : vector<128x32xf32>
    %173 = arith.addf %150, %172 : vector<128x32xf32>
    %174 = vector.broadcast %162 : vector<1x32xf32> to vector<128x32xf32>
    %175 = arith.mulf %170, %174 : vector<128x32xf32>
    %176 = arith.subf %173, %175 : vector<128x32xf32>
    %177 = vector.broadcast %162 : vector<1x32xf32> to vector<128x32xf32>
    %178 = arith.mulf %168, %177 : vector<128x32xf32>
    %179 = arith.addf %156, %178 : vector<128x32xf32>
    %180 = vector.broadcast %159 : vector<1x32xf32> to vector<128x32xf32>
    %181 = arith.mulf %170, %180 : vector<128x32xf32>
    %182 = arith.addf %179, %181 : vector<128x32xf32>
    %183 = vector.extract_strided_slice %176 {offsets = [126, 0], sizes = [2, 32], strides = [1, 1]} : vector<128x32xf32> to vector<2x32xf32>
    %c0_60 = arith.constant 0 : index
    %c0_61 = arith.constant 0 : index
    %184 = vector.load %arg12[%c0_60, %c0_61] : memref<2x32xf32, #tpu.memory_space<vmem>>, vector<2x32xf32>
    tpu.vector_store %arg12[%c0_60, %c0_61], %183 {strides = array<i32>} : memref<2x32xf32, #tpu.memory_space<vmem>>, vector<2x32xf32>,
    %185 = vector.extract_strided_slice %182 {offsets = [126, 0], sizes = [2, 32], strides = [1, 1]} : vector<128x32xf32> to vector<2x32xf32>
    %c0_62 = arith.constant 0 : index
    %c0_63 = arith.constant 0 : index
    %186 = vector.load %arg13[%c0_62, %c0_63] : memref<2x32xf32, #tpu.memory_space<vmem>>, vector<2x32xf32>
    tpu.vector_store %arg13[%c0_62, %c0_63], %185 {strides = array<i32>} : memref<2x32xf32, #tpu.memory_space<vmem>>, vector<2x32xf32>,
    %c0_64 = arith.constant 0 : index
    %c0_65 = arith.constant 0 : index
    %187 = vector.load %arg7[%c0_64, %c0_65] : memref<32x16xf32, #tpu.memory_space<vmem>>, vector<32x16xf32>
    %cst_66 = arith.constant dense<0.000000e+00> : vector<128x16xf32>
    %188 = tpu.matmul %176, %187, %cst_66 {dimension_numbers = #tpu.dot_dimension_numbers<[1], [0], [0], [1], [0, 0, 1, 1], [], []>} : vector<128x32xf32>, vector<32x16xf32>, vector<128x16xf32> -> vector<128x16xf32>
    %c0_67 = arith.constant 0 : index
    %c0_68 = arith.constant 0 : index
    %189 = vector.load %arg8[%c0_67, %c0_68] : memref<32x16xf32, #tpu.memory_space<vmem>>, vector<32x16xf32>
    %cst_69 = arith.constant dense<0.000000e+00> : vector<128x16xf32>
    %190 = tpu.matmul %182, %189, %cst_69 {dimension_numbers = #tpu.dot_dimension_numbers<[1], [0], [0], [1], [0, 0, 1, 1], [], []>} : vector<128x32xf32>, vector<32x16xf32>, vector<128x16xf32> -> vector<128x16xf32>
    %191 = arith.subf %188, %190 : vector<128x16xf32>
    %c0_70 = arith.constant 0 : index
    %c0_71 = arith.constant 0 : index
    %192 = vector.load %arg9[%c0_70, %c0_71] : memref<1x16xf32, #tpu.memory_space<vmem>>, vector<1x16xf32>
    %193 = vector.broadcast %192 : vector<1x16xf32> to vector<128x16xf32>
    %194 = arith.mulf %3, %193 : vector<128x16xf32>
    %195 = arith.addf %191, %194 : vector<128x16xf32>
    %c0_72 = arith.constant 0 : index
    %c0_73 = arith.constant 0 : index
    %196 = vector.load %arg10[%c0_72, %c0_73] : memref<128x16xf32, #tpu.memory_space<vmem>>, vector<128x16xf32>
    tpu.vector_store %arg10[%c0_72, %c0_73], %195 {strides = array<i32>} : memref<128x16xf32, #tpu.memory_space<vmem>>, vector<128x16xf32>,
    %c0_i32_74 = arith.constant 0 : i32
    %197 = arith.cmpi eq, %arg0, %c0_i32_74 : i32
    %198 = arith.extui %197 : i1 to i32
    %c0_i32_75 = arith.constant 0 : i32
    %199 = arith.cmpi ne, %198, %c0_i32_75 : i32
    scf.if %199 {
      %c0_76 = arith.constant 0 : index
      %c0_77 = arith.constant 0 : index
      %200 = vector.load %arg12[%c0_76, %c0_77] : memref<2x32xf32, #tpu.memory_space<vmem>>, vector<2x32xf32>
      %c0_78 = arith.constant 0 : index
      %c0_79 = arith.constant 0 : index
      %c0_80 = arith.constant 0 : index
      %201 = vector.load %arg11[%c0_78, %c0_79, %c0_80] : memref<2x2x32xf32, #tpu.memory_space<vmem>>, vector<1x2x32xf32>
      %202 = vector.shape_cast %201 : vector<1x2x32xf32> to vector<2x32xf32>
      %203 = vector.shape_cast %200 : vector<2x32xf32> to vector<1x2x32xf32>
      tpu.vector_store %arg11[%c0_78, %c0_79, %c0_80], %203 {strides = array<i32>} : memref<2x2x32xf32, #tpu.memory_space<vmem>>, vector<1x2x32xf32>,
      %c0_81 = arith.constant 0 : index
      %c0_82 = arith.constant 0 : index
      %204 = vector.load %arg13[%c0_81, %c0_82] : memref<2x32xf32, #tpu.memory_space<vmem>>, vector<2x32xf32>
      %c1 = arith.constant 1 : index
      %c0_83 = arith.constant 0 : index
      %c0_84 = arith.constant 0 : index
      %205 = vector.load %arg11[%c1, %c0_83, %c0_84] : memref<2x2x32xf32, #tpu.memory_space<vmem>>, vector<1x2x32xf32>
      %206 = vector.shape_cast %205 : vector<1x2x32xf32> to vector<2x32xf32>
      %207 = vector.shape_cast %204 : vector<2x32xf32> to vector<1x2x32xf32>
      tpu.vector_store %arg11[%c1, %c0_83, %c0_84], %207 {strides = array<i32>} : memref<2x2x32xf32, #tpu.memory_space<vmem>>, vector<1x2x32xf32>,
    } else {
    }
    return
  }
  func.func @transform_0(%arg0: i32) -> (i32, i32) {
    %c0_i32 = arith.constant 0 : i32
    %c0_i32_0 = arith.constant 0 : i32
    return %arg0, %c0_i32 : i32, i32
  }
  func.func @transform_1(%arg0: i32) -> (i32, i32, i32) {
    %c0_i32 = arith.constant 0 : i32
    %c0_i32_0 = arith.constant 0 : i32
    %c0_i32_1 = arith.constant 0 : i32
    %c0_i32_2 = arith.constant 0 : i32
    return %c0_i32, %c0_i32_0, %c0_i32_1 : i32, i32, i32
  }
  func.func @transform_2(%arg0: i32) -> (i32, i32) {
    %c0_i32 = arith.constant 0 : i32
    %c0_i32_0 = arith.constant 0 : i32
    %c0_i32_1 = arith.constant 0 : i32
    return %c0_i32, %c0_i32_0 : i32, i32
  }
  func.func @transform_3(%arg0: i32) -> (i32, i32) {
    %c0_i32 = arith.constant 0 : i32
    %c0_i32_0 = arith.constant 0 : i32
    %c0_i32_1 = arith.constant 0 : i32
    return %c0_i32, %c0_i32_0 : i32, i32
  }
  func.func @transform_4(%arg0: i32) -> (i32, i32) {
    %c0_i32 = arith.constant 0 : i32
    %c0_i32_0 = arith.constant 0 : i32
    %c0_i32_1 = arith.constant 0 : i32
    return %c0_i32, %c0_i32_0 : i32, i32
  }
  func.func @transform_5(%arg0: i32) -> (i32, i32) {
    %c0_i32 = arith.constant 0 : i32
    %c0_i32_0 = arith.constant 0 : i32
    %c0_i32_1 = arith.constant 0 : i32
    return %c0_i32, %c0_i32_0 : i32, i32
  }
  func.func @transform_6(%arg0: i32) -> (i32, i32) {
    %c0_i32 = arith.constant 0 : i32
    %c0_i32_0 = arith.constant 0 : i32
    %c0_i32_1 = arith.constant 0 : i32
    return %c0_i32, %c0_i32_0 : i32, i32
  }
  func.func @transform_7(%arg0: i32) -> (i32, i32) {
    %c0_i32 = arith.constant 0 : i32
    %c0_i32_0 = arith.constant 0 : i32
    %c0_i32_1 = arith.constant 0 : i32
    return %c0_i32, %c0_i32_0 : i32, i32
  }
  func.func @transform_8(%arg0: i32) -> (i32, i32) {
    %c0_i32 = arith.constant 0 : i32
    %c0_i32_0 = arith.constant 0 : i32
    %c0_i32_1 = arith.constant 0 : i32
    return %c0_i32, %c0_i32_0 : i32, i32
  }
  func.func @transform_9(%arg0: i32) -> (i32, i32) {
    %c0_i32 = arith.constant 0 : i32
    %c0_i32_0 = arith.constant 0 : i32
    return %arg0, %c0_i32 : i32, i32
  }
  func.func @transform_10(%arg0: i32) -> (i32, i32, i32) {
    %c0_i32 = arith.constant 0 : i32
    %c0_i32_0 = arith.constant 0 : i32
    %c0_i32_1 = arith.constant 0 : i32
    %c0_i32_2 = arith.constant 0 : i32
    return %c0_i32, %c0_i32_0, %c0_i32_1 : i32, i32, i32
  }
}

</mosaic_0001>

<bundles_post_ra>
// kernel: tpu_custom_call.1
= control target key start
LH: loop header
LB: loop body
LE: loop exit
PB: predicated region body
PF: predicated region fallthrough
CT: control target
= control target key end

     0   :  { %vm63_vm0 = vcmask 130048   ;;  %s4432_s0 = inlined_call_operand.vmem [shape: f32[128,16], index: 0, kind: input, shape index: {}]   ;;  %s4433_s1 = inlined_call_operand.vmem [shape: f32[2,2,32], index: 1, kind: input, shape index: {}]   ;;  %s4434_s2 = inlined_call_operand.vmem [shape: f32[1,32], index: 2, kind: input, shape index: {}]   ;;  %s4435_s3 = inlined_call_operand.vmem [shape: f32[1,32], index: 3, kind: input, shape index: {}]   ;;  %s4436_s4 = inlined_call_operand.vmem [shape: f32[16,32], index: 4, kind: input, shape index: {}]   ;;  %s4437_s5 = inlined_call_operand.vmem [shape: f32[16,32], index: 5, kind: input, shape index: {}]   ;;  %s4438_s6 = inlined_call_operand.vmem [shape: f32[32,16], index: 6, kind: input, shape index: {}]   ;;  %s4439_s7 = inlined_call_operand.vmem [shape: f32[32,16], index: 7, kind: input, shape index: {}]   ;;  %s4440_s8 = inlined_call_operand.vmem [shape: f32[1,16], index: 8, kind: input, shape index: {}]   ;;  %s4441_s9 = inlined_call_operand.vmem [shape: f32[128,16], index: 9, kind: output, shape index: {0}]   ;;  %s4442_s10 = inlined_call_operand.hbm [shape: f32[2,2,32], index: 10, kind: output, shape index: {1}]  }
   0x1   :  { %v61_v0 = vld [vmem:[%s4436_s4] sm:$0xff]  ;;  %v62_v1 = vld [vmem:[%s4436_s4 + $0x8] sm:$0xff]  ;;  %v47_v8 = vld [vmem:[%s4432_s0 + $0x10] sm:$0xff] }
   0x2   :  { %v274_v2 = vld [vmem:[%s4437_s5] sm:$0xff]  ;;  %v2544_v3 = vpack.c.bf16 %v62_v1, %v61_v0  ;;  %v275_v4 = vld [vmem:[%s4437_s5 + $0x8] sm:$0xff] }
   0x3   :  { %v45_v5 = vld [vmem:[%s4432_s0] sm:$0xff]  ;;  %v2548_v6 = vpack.c.bf16 %v275_v4, %v274_v2  ;;  %v46_v7 = vld [vmem:[%s4432_s0 + $0x8] sm:$0xff] }
   0x4   :  { %2428 = vmatprep.mubr.msk.f32.mxu0 %vm63_vm0, %v45_v5  ;;  %2456 = vmatprep.mubr.msk.f32.mxu1 %vm63_vm0, %v45_v5 }
   0x5   :  { %2545 = vmatprep.subr.bf16.mxu0 %v2544_v3  ;;  %2549 = vmatprep.subr.bf16.mxu1 %v2548_v6 }
   0x6   :  { %2547 = vmatpush3.bf16.msra.mxu0 %v2544_v3  ;;  %2551 = vmatpush3.bf16.msra.mxu1 %v2548_v6 }
   0x9   :  { %2429 = vmatmul.mubr.msk.f32.vlgmr.msra.gmra.mrb[0].mxu0 %vm63_vm0, %v46_v7 }
   0xa   :  { %16 = vsyncpa [#allocation7], 0  ;;  %2457 = vmatmul.mubr.msk.f32.vlgmr.msra.gmra.mrb[0].mxu1 %vm63_vm0, %v46_v7  ;;  %2431 = vmatprep.mubr.msk.f32.mxu0 %vm63_vm0, %v47_v8  ;;  %v48_v9 = vld [vmem:[%s4432_s0 + $0x18] sm:$0xff]  ;;  %v49_v10 = vld [vmem:[%s4432_s0 + $0x20] sm:$0xff]  ;;  %vm40_vm1 = vcmask 254976   ;;  %v443_v43 = vlaneseq  ;;  %vm257_vm2 = vcmask 261120  }
   0xb   :  { %2459 = vmatprep.mubr.msk.f32.mxu1 %vm63_vm0, %v47_v8  ;;  %v50_v11 = vld [vmem:[%s4432_s0 + $0x28] sm:$0xff]  ;;  %v51_v12 = vld [vmem:[%s4432_s0 + $0x30] sm:$0xff]  ;;  %v52_v13 = vld [vmem:[%s4432_s0 + $0x38] sm:$0xff]  ;;  %vm1786_vm7 = vcmask 261126   ;;  %s2614_s22 = smov [#allocation6]  }
   0xc   :  { %v53_v14 = vld [vmem:[%s4432_s0 + $0x40] sm:$0xff]  ;;  %v54_v15 = vld [vmem:[%s4432_s0 + $0x48] sm:$0xff]  ;;  %v55_v16 = vld [vmem:[%s4432_s0 + $0x50] sm:$0xff]  ;;  %v2811_v47 = vshrl.u32 %v443_v43, 7  ;;  %s2269_s4 = sshll.u32 %s2614_s22, 4  ;;  %s2270_s4 = int_to_ptr.vmem [resolvable:$true] %s2269_s4 }
   0xd   :  { %2432 = vmatmul.mubr.msk.f32.gmra.mrb[2].mxu0 %vm63_vm0, %v48_v9  ;;  %v56_v17 = vld [vmem:[%s4432_s0 + $0x58] sm:$0xff]  ;;  %v57_v18 = vld [vmem:[%s4432_s0 + $0x60] sm:$0xff]  ;;  %v58_v19 = vld [vmem:[%s4432_s0 + $0x68] sm:$0xff]  ;;  %s2590_s23 = scalar_lea.vmem %s2270_s4, 64  ;;  %p2595_p1 = scmp.lt.s32.totalorder %s2270_s4, %s2270_s4 }
   0xe   :  { %2460 = vmatmul.mubr.msk.f32.gmra.mrb[2].mxu1 %vm63_vm0, %v48_v9  ;;  %2434 = vmatprep.mubr.msk.f32.mxu0 %vm63_vm0, %v49_v10  ;;  %v59_v20 = vld [vmem:[%s4432_s0 + $0x70] sm:$0xff]  ;;  %v60_v21 = vld [vmem:[%s4432_s0 + $0x78] sm:$0xff]  ;;  %v39_v22 = vld [vmem:[%s4433_s1] sm:$0x3]  ;;  %v2824_v53 = vsub.s32 0, %v2811_v47  ;;  %vm531_vm3 = vcmp.lt.s32.totalorder %v2811_v47, 2  ;;  %p2591_p0 = scmp.ne.s32.totalorder %s2270_s4, %s2590_s23  ;;  %p2596_p2 = scmp.lt.s32.totalorder %s2590_s23, %s2590_s23 }
   0xf   :  { %2462 = vmatprep.mubr.msk.f32.mxu1 %vm63_vm0, %v49_v10  ;;  %41 = vst.msk [vmem:[#allocation2] sm:$0x3] %vm40_vm1, %v39_v22  ;;  %v2282_v23 = vld [vmem:[%s4433_s1 + $0x2] sm:$0x3]  ;;  %v1790_v25 = vld [vmem:[%s4438_s6 + $0x8] sm:$0xff]  ;;  %v1791_v29 = vld [vmem:[%s4438_s6 + $0x10] sm:$0xff] }
  0x10   :  { %44 = vst.msk [vmem:[#allocation3] sm:$0x3] %vm40_vm1, %v2282_v23  ;;  %v1789_v24 = vld [vmem:[%s4438_s6] sm:$0xff]  ;;  %v1987_v28 = vld [vmem:[%s4439_s7 + $0x8] sm:$0xff]  ;;  %v1792_v30 = vld [vmem:[%s4438_s6 + $0x18] sm:$0xff]  ;;  %vm580_vm4 = vcmp.ge.s32.totalorder %v2811_v47, 2  ;;  %p2597_p3 = por %p2596_p2, %p2595_p1 }
  0x11   :  { %2435 = vmatmul.mubr.msk.f32.gmra.mrb[4].mxu0 %vm63_vm0, %v50_v11  ;;  %v1986_v26 = vld [vmem:[%s4439_s7] sm:$0xff]  ;;  %v2552_v27 = vpack.c.bf16 %v1790_v25, %v1789_v24  ;;  %v2556_v32 = vpack.c.bf16 %v1792_v30, %v1791_v29  ;;  %v1988_v33 = vld [vmem:[%s4439_s7 + $0x10] sm:$0xff]  ;;  %v1989_v34 = vld [vmem:[%s4439_s7 + $0x18] sm:$0xff]  ;;  %vm777_vm5 = vcmp.lt.s32.totalorder %v2811_v47, 4  ;;  %vm826_vm6 = vcmp.ge.s32.totalorder %v2811_v47, 4 }
  0x12   :  { %2463 = vmatmul.mubr.msk.f32.gmra.mrb[4].mxu1 %vm63_vm0, %v50_v11  ;;  %2437 = vmatprep.mubr.msk.f32.mxu0 %vm63_vm0, %v51_v12  ;;  %v2560_v31 = vpack.c.bf16 %v1987_v28, %v1986_v26  ;;  %v2564_v35 = vpack.c.bf16 %v1989_v34, %v1988_v33  ;;  %v437_v36 = vld [vmem:[%s4434_s2] sm:$0x1]  ;;  %p2598_p4 = pnand %p2597_p3, %p2591_p0 }
  0x13   :  { %2465 = vmatprep.mubr.msk.f32.mxu1 %vm63_vm0, %v51_v12  ;;  %2553 = vmatprep.subr.bf16.mxu0 %v2552_v27  ;;  %v438_v37 = vld [vmem:[%s4435_s3] sm:$0x1]  ;;  %v756_v38 = vmul.f32 %v437_v36, %v437_v36  ;;  %v759_v40 = vmul.f32 2.0, %v437_v36  ;;  %v2835_v59 = vrot.slane %v437_v36, %v2824_v53 }
  0x14   :  { %2561 = vmatprep.subr.bf16.mxu1 %v2560_v31  ;;  %2555 = vmatpush3.bf16.msra.mxu0 %v2552_v27  ;;  %v757_v39 = vmul.f32 %v438_v37, %v438_v37  ;;  %v2838_v62 = vrot.slane %v438_v37, %v2824_v53 }
  0x15   :  { %2438 = vmatmul.mubr.msk.f32.gmra.mrb[6].mxu0 %vm63_vm0, %v52_v13  ;;  %2563 = vmatpush3.bf16.msra.mxu1 %v2560_v31  ;;  %v2804_v42 = vmul.f32 %v759_v40, %v438_v37 }
  0x16   :  { %2466 = vmatmul.mubr.msk.f32.gmra.mrb[6].mxu1 %vm63_vm0, %v52_v13  ;;  %2440 = vmatprep.mubr.msk.f32.mxu0 %vm63_vm0, %v53_v14  ;;  %v2802_v41 = vsub.f32 %v756_v38, %v757_v39  ;;  %v439_v61 = vld [vmem:[#allocation2] sm:$0x3] }
  0x17   :  { %2468 = vmatprep.mubr.msk.f32.mxu1 %vm63_vm0, %v53_v14  ;;  %2557 = vmatprep.subr.bf16.mxu0 %v2556_v32  ;;  %v1015_v45 = vmul.f32 %v2804_v42, %v2804_v42  ;;  %v440_v3 = vld [vmem:[#allocation3] sm:$0x3]  ;;  %v448_v6 = vmul.f32 %v2835_v59, %v439_v61  ;;  %v461_v8 = vmul.f32 %v2838_v62, %v439_v61 }
  0x18   :  { %2565 = vmatprep.subr.bf16.mxu1 %v2564_v35  ;;  %2559 = vmatpush3.bf16.msra.mxu0 %v2556_v32  ;;  %v1014_v44 = vmul.f32 %v2802_v41, %v2802_v41  ;;  %v1017_v46 = vmul.f32 2.0, %v2802_v41  ;;  %v456_v11 = vmul.f32 %v2838_v62, %v440_v3  ;;  %v463_v14 = vmul.f32 %v2835_v59, %v440_v3 }
  0x19   :  { %2441 = vmatmul.mubr.msk.f32.gmra.mrb[8].mxu0 %vm63_vm0, %v54_v15  ;;  %2567 = vmatpush3.bf16.msra.mxu1 %v2564_v35  ;;  %v2877_v39 = vrot.slane %v2802_v41, %v2824_v53 }
  0x1a   :  { %2469 = vmatmul.mubr.msk.f32.gmra.mrb[8].mxu1 %vm63_vm0, %v54_v15  ;;  %2443 = vmatprep.mubr.msk.f32.mxu0 %vm63_vm0, %v55_v16  ;;  %v2813_v48 = vsub.f32 %v1014_v44, %v1015_v45  ;;  %v2816_v49 = vmul.f32 %v1017_v46, %v2804_v42  ;;  %v2884_v45 = vrot.slane %v2804_v42, %v2824_v53 }
  0x1b   :  { %2471 = vmatprep.mubr.msk.f32.mxu1 %vm63_vm0, %v55_v16 }
  0x1c   :  { %v1207_v50 = vmul.f32 %v2813_v48, %v2813_v48  ;;  %v1208_v51 = vmul.f32 %v2816_v49, %v2816_v49  ;;  %v1210_v52 = vmul.f32 2.0, %v2813_v48  ;;  %v2888_v46 = vrot.slane %v2813_v48, %v2824_v53 }
  0x1d   :  { %2444 = vmatmul.mubr.msk.f32.gmra.mrb[10].mxu0 %vm63_vm0, %v56_v17 }
  0x1e   :  { %2472 = vmatmul.mubr.msk.f32.gmra.mrb[10].mxu1 %vm63_vm0, %v56_v17  ;;  %2446 = vmatprep.mubr.msk.f32.mxu0 %vm63_vm0, %v57_v18  ;;  %v2827_v57 = vsub.f32 %v1207_v50, %v1208_v51  ;;  %v2830_v58 = vmul.f32 %v1210_v52, %v2816_v49  ;;  %v2898_v52 = vrot.slane %v2816_v49, %v2824_v53 }
  0x1f   :  { %2474 = vmatprep.mubr.msk.f32.mxu1 %vm63_vm0, %v57_v18 }
  0x20   :  { %v1400_v63 = vmul.f32 %v2827_v57, %v2827_v57  ;;  %v1401_v0 = vmul.f32 %v2830_v58, %v2830_v58  ;;  %v1403_v1 = vmul.f32 2.0, %v2827_v57  ;;  %v2902_v42 = vrot.slane %v2827_v57, %v2824_v53 }
  0x21   :  { %2447 = vmatmul.mubr.msk.f32.gmra.mrb[12].mxu0 %vm63_vm0, %v58_v19  ;;  %v2906_v48 = vrot.slane %v2830_v58, %v2824_v53  ;;  %v2938_v3 = vmul.f32 0.0, %v2898_v52 }
  0x22   :  { %2475 = vmatmul.mubr.msk.f32.gmra.mrb[12].mxu1 %vm63_vm0, %v58_v19  ;;  %2449 = vmatprep.mubr.msk.f32.mxu0 %vm63_vm0, %v59_v20  ;;  %v1402_v9 = vsub.f32 %v1400_v63, %v1401_v0  ;;  %v1404_v10 = vmul.f32 %v1403_v1, %v2830_v58 }
  0x23   :  { %2477 = vmatprep.mubr.msk.f32.mxu1 %vm63_vm0, %v59_v20 }
  0x24   :  { %v1593_v17 = vmul.f32 %v1402_v9, %v1402_v9  ;;  %v1594_v18 = vmul.f32 %v1404_v10, %v1404_v10  ;;  %v1596_v22 = vmul.f32 2.0, %v1402_v9  ;;  %v2920_v57 = vrot.slane %v1402_v9, %v2824_v53 }
  0x25   :  { %2450 = vmatmul.mubr.msk.f32.gmra.mrb[14].mxu0 %vm63_vm0, %v60_v21  ;;  %v2923_v58 = vrot.slane %v1404_v10, %v2824_v53 }
  0x26   :  { %2478 = vmatmul.mubr.msk.f32.gmra.mrb[14].mxu1 %vm63_vm0, %v60_v21  ;;  %v1595_v34 = vsub.f32 %v1593_v17, %v1594_v18  ;;  %v1597_v40 = vmul.f32 %v1596_v22, %v1404_v10  ;;  %v2967_v17 = vmul.f32 0.0, %v2920_v57 }
  0x27   :  { %v2970_v18 = vmul.f32 0.0, %v2923_v58 }
  0x28   :  { %v2926_v61 = vrot.slane %v1595_v34, %v2824_v53  ;;  %v2932_v1 = vrot.slane %v1597_v40, %v2824_v53  ;;  %v2950_v53 = vmul.f32 0.0, %v2906_v48 }
  0x2a   :  { %4516 = vst [vmem:[#allocation10_spill] sm:$0xff] %v2926_v61  ;;  %4517 = vst [vmem:[#allocation11_spill] sm:$0xff] %v2932_v1 }
  0xdc   :  { %v2430_v54 = vpop.f32.mrb[0].mxu0 }
  0xdd   :  { %259 = vst.msk [vmem:[#allocation4 + $0x8] sm:$0xff] %vm257_vm2, %v2430_v54  ;;  %v2458_v55 = vpop.f32.mrb[0].mxu1  ;;  %v178_v56 = vpop.f32.mrb[1].mxu0 }
  0xde   :  { %422 = vst.msk [vmem:[#allocation5 + $0x8] sm:$0xff] %vm257_vm2, %v2458_v55  ;;  %258 = vst.msk [vmem:[#allocation4] sm:$0xff] %vm257_vm2, %v178_v56  ;;  %v342_v60 = vpop.f32.mrb[1].mxu1 }
  0xdf   :  { %421 = vst.msk [vmem:[#allocation5] sm:$0xff] %vm257_vm2, %v342_v60 }
  0xe0   :  { %v2433_v2 = vpop.f32.mrb[2].mxu0 }
  0xe1   :  { %261 = vst.msk [vmem:[#allocation4 + $0x18] sm:$0xff] %vm257_vm2, %v2433_v2  ;;  %v2461_v4 = vpop.f32.mrb[2].mxu1  ;;  %v188_v5 = vpop.f32.mrb[3].mxu0  ;;  %v2935_v2 = vmul.f32 0.0, %v2888_v46 }
  0xe2   :  { %424 = vst.msk [vmem:[#allocation5 + $0x18] sm:$0xff] %vm257_vm2, %v2461_v4  ;;  %260 = vst.msk [vmem:[#allocation4 + $0x10] sm:$0xff] %vm257_vm2, %v188_v5  ;;  %v352_v7 = vpop.f32.mrb[3].mxu1 }
  0xe3   :  { %423 = vst.msk [vmem:[#allocation5 + $0x10] sm:$0xff] %vm257_vm2, %v352_v7 }
  0xe4   :  { %v2436_v12 = vpop.f32.mrb[4].mxu0  ;;  %v2858_v23 = vld [vmem:[#allocation4 + $0x8] sm:$0xff] }
  0xe5   :  { %v441_v13 = vld [vmem:[#allocation4] sm:$0x3]  ;;  %263 = vst.msk [vmem:[#allocation4 + $0x28] sm:$0xff] %vm257_vm2, %v2436_v12  ;;  %v2464_v15 = vpop.f32.mrb[4].mxu1  ;;  %v198_v16 = vpop.f32.mrb[5].mxu0  ;;  %v516_v35 = vrot.slane %v2858_v23, 6 }
  0xe6   :  { %v449_v19 = vadd.f32 %v448_v6, %v441_v13  ;;  %v460_v20 = vld [vmem:[#allocation5] sm:$0x3]  ;;  %426 = vst.msk [vmem:[#allocation5 + $0x28] sm:$0xff] %vm257_vm2, %v2464_v15  ;;  %262 = vst.msk [vmem:[#allocation4 + $0x20] sm:$0xff] %vm257_vm2, %v198_v16  ;;  %v362_v21 = vpop.f32.mrb[5].mxu1  ;;  %v2890_v50 = vld [vmem:[#allocation5 + $0x8] sm:$0xff] }
  0xe7   :  { %v462_v24 = vadd.f32 %v461_v8, %v460_v20  ;;  %425 = vst.msk [vmem:[#allocation5 + $0x20] sm:$0xff] %vm257_vm2, %v362_v21  ;;  %v549_v4 = vrot.slane %v2890_v50, 6  ;;  %v2947_v6 = vmul.f32 0.0, %v2902_v42 }
  0xe8   :  { %v457_v25 = vsub.f32 %v449_v19, %v456_v11  ;;  %v2861_v26 = vld [vmem:[#allocation4 + $0x18] sm:$0xff]  ;;  %v2439_v27 = vpop.f32.mrb[6].mxu0  ;;  %v2973_v19 = vmul.f32 0.0, %v2926_v61 }
  0xe9   :  { %v464_v28 = vadd.f32 %v463_v14, %v462_v24  ;;  %v518_v29 = vrot.slane %v2861_v26, 6  ;;  %v2865_v30 = vld [vmem:[#allocation5 + $0x18] sm:$0xff]  ;;  %v2867_v31 = vld [vmem:[#allocation4 + $0x10] sm:$0xff]  ;;  %265 = vst.msk [vmem:[#allocation4 + $0x38] sm:$0xff] %vm257_vm2, %v2439_v27  ;;  %v2467_v32 = vpop.f32.mrb[6].mxu1  ;;  %v208_v33 = vpop.f32.mrb[7].mxu0 }
  0xea   :  { %459 = vst.msk [vmem:[#allocation4] sm:$0x3] %vm40_vm1, %v457_v25  ;;  %v517_v36 = vrot.slane %v2867_v31, 6  ;;  %v484_v37 = vld [vmem:[#allocation5 + $0x10] sm:$0xff]  ;;  %v372_v38 = vpop.f32.mrb[7].mxu1  ;;  %v551_v43 = vrot.slane %v2865_v30, 6 }
  0xeb   :  { %428 = vst.msk [vmem:[#allocation5 + $0x38] sm:$0xff] %vm257_vm2, %v2467_v32  ;;  %264 = vst.msk [vmem:[#allocation4 + $0x30] sm:$0xff] %vm257_vm2, %v208_v33  ;;  %v550_v44 = vrot.slane %v484_v37, 6 }
  0xec   :  { %465 = vst.msk [vmem:[#allocation5] sm:$0x3] %vm40_vm1, %v464_v28  ;;  %v545_v41 = vsel %vm531_vm3, %v516_v35, %v517_v36  ;;  %v2442_v51 = vpop.f32.mrb[8].mxu0  ;;  %v2912_v54 = vsel %vm531_vm3, %v517_v36, %v518_v29  ;;  %v2914_v55 = vld [vmem:[#allocation4 + $0x28] sm:$0xff]  ;;  %v2981_v28 = vmul.f32 0.0, %v2932_v1 }
  0xed   :  { %427 = vst.msk [vmem:[#allocation5 + $0x30] sm:$0xff] %vm257_vm2, %v372_v38  ;;  %4515 = vst [vmem:[#allocation9_spill] sm:$0xff] %v2914_v55  ;;  %v2916_v56 = vld [vmem:[#allocation4 + $0x20] sm:$0xff]  ;;  %v2470_v49 = vpop.f32.mrb[8].mxu1  ;;  %v218_v60 = vpop.f32.mrb[9].mxu0  ;;  %v694_v63 = vmul.f32 %v545_v41, %v2838_v62  ;;  %v576_v5 = vsel %vm531_vm3, %v550_v44, %v551_v43  ;;  %v630_v7 = vmul.f32 %v545_v41, %v2835_v59  ;;  %v520_v9 = vrot.slane %v2914_v55, 6 }
  0xee   :  { %267 = vst.msk [vmem:[#allocation4 + $0x48] sm:$0xff] %vm257_vm2, %v2442_v51  ;;  %430 = vst.msk [vmem:[#allocation5 + $0x48] sm:$0xff] %vm257_vm2, %v2470_v49  ;;  %v382_v0 = vpop.f32.mrb[9].mxu1  ;;  %v695_v8 = vmul.f32 %v2912_v54, %v2838_v62  ;;  %v2956_v10 = vld [vmem:[#allocation5 + $0x28] sm:$0xff]  ;;  %v519_v11 = vrot.slane %v2916_v56, 6  ;;  %v2959_v12 = vld [vmem:[#allocation5 + $0x20] sm:$0xff]  ;;  %v577_v15 = vsel %vm531_vm3, %v549_v4, %v550_v44  ;;  %v727_v24 = vmul.f32 %v576_v5, %v2835_v59 }
  0xef   :  { %266 = vst.msk [vmem:[#allocation4 + $0x40] sm:$0xff] %vm257_vm2, %v218_v60  ;;  %429 = vst.msk [vmem:[#allocation5 + $0x40] sm:$0xff] %vm257_vm2, %v382_v0  ;;  %v710_v22 = vadd.f32 %v694_v63, %v484_v37  ;;  %v4445_v33 = vrot.slane %v2956_v10, 6  ;;  %v552_v36 = vrot.slane %v2959_v12, 6  ;;  %v646_v38 = vadd.f32 %v630_v7, %v2867_v31 }
  0xf0   :  { %v2445_v13 = vpop.f32.mrb[10].mxu0  ;;  %v542_v34 = vsel %vm531_vm3, %v519_v11, %v520_v9  ;;  %v711_v40 = vadd.f32 %v695_v8, %v2865_v30  ;;  %v726_v44 = vmul.f32 %v577_v15, %v2835_v59  ;;  %v3001_v41 = vld [vmem:[#allocation4 + $0x38] sm:$0xff]  ;;  %v543_v31 = vsel %vm531_vm3, %v518_v29, %v519_v11 }
  0xf1   :  { %v2961_v14 = vld [vmem:[#allocation4] sm:$0xff]  ;;  %269 = vst.msk [vmem:[#allocation4 + $0x58] sm:$0xff] %vm257_vm2, %v2445_v13  ;;  %v2473_v16 = vpop.f32.mrb[10].mxu1  ;;  %v228_v25 = vpop.f32.mrb[11].mxu0  ;;  %4518 = vst [vmem:[#allocation12_spill] sm:$0xff] %v3001_v41  ;;  %v3018_v8 = vmul.f32 %v2912_v54, %v2835_v59  ;;  %v662_v13 = vmul.f32 %v577_v15, %v2838_v62  ;;  %v574_v54 = vsel %vm531_vm3, %v552_v36, %v4445_v33  ;;  %v522_v15 = vrot.slane %v3001_v41, 6 }
  0xf2   :  { %v4444_v20 = vrot.slane %v2961_v14, 6  ;;  %432 = vst.msk [vmem:[#allocation5 + $0x58] sm:$0xff] %vm257_vm2, %v2473_v16  ;;  %v392_v27 = vpop.f32.mrb[11].mxu1  ;;  %268 = vst.msk [vmem:[#allocation4 + $0x50] sm:$0xff] %vm257_vm2, %v228_v25  ;;  %v3022_v16 = vmul.f32 %v576_v5, %v2838_v62  ;;  %v3028_v25 = vadd.f32 %v726_v44, %v710_v22  ;;  %v4525_v41 = vrot.slane %v2956_v10, 6 }
  0xf3   :  { %v2976_v21 = vld [vmem:[#allocation5] sm:$0xff]  ;;  %431 = vst.msk [vmem:[#allocation5 + $0x50] sm:$0xff] %vm257_vm2, %v392_v27 }
  0xf4   :  { %v4443_v32 = vrot.slane %v2976_v21, 6  ;;  %v546_v37 = vsel %vm531_vm3, %v4444_v20, %v516_v35  ;;  %v2448_v51 = vpop.f32.mrb[12].mxu0  ;;  %v3013_v35 = vld [vmem:[#allocation4 + $0x30] sm:$0xff] }
  0xf5   :  { %v629_v49 = vmul.f32 %v546_v37, %v2835_v59  ;;  %v693_v60 = vmul.f32 %v546_v37, %v2838_v62  ;;  %271 = vst.msk [vmem:[#allocation4 + $0x68] sm:$0xff] %vm257_vm2, %v2448_v51  ;;  %v2476_v0 = vpop.f32.mrb[12].mxu1  ;;  %v238_v7 = vpop.f32.mrb[13].mxu0  ;;  %v696_v37 = vmul.f32 %v543_v31, %v2838_v62  ;;  %v3039_v51 = vld [vmem:[#allocation5 + $0x38] sm:$0xff]  ;;  %v488_v22 = vld [vmem:[#allocation5 + $0x30] sm:$0xff] }
  0xf6   :  { %v578_v63 = vsel %vm531_vm3, %v4443_v32, %v549_v4  ;;  %v697_v4 = vmul.f32 %v542_v34, %v2838_v62  ;;  %434 = vst.msk [vmem:[#allocation5 + $0x68] sm:$0xff] %vm257_vm2, %v2476_v0  ;;  %270 = vst.msk [vmem:[#allocation4 + $0x60] sm:$0xff] %vm257_vm2, %v238_v7  ;;  %v402_v29 = vpop.f32.mrb[13].mxu1  ;;  %v632_v0 = vmul.f32 %v543_v31, %v2835_v59  ;;  %v3057_v31 = vld [vmem:[#allocation4 + $0x48] sm:$0xff] }
  0xf7   :  { %v645_v11 = vadd.f32 %v629_v49, %v2858_v23  ;;  %433 = vst.msk [vmem:[#allocation5 + $0x60] sm:$0xff] %vm257_vm2, %v402_v29  ;;  %v709_v5 = vadd.f32 %v693_v60, %v2890_v50  ;;  %v661_v27 = vmul.f32 %v578_v63, %v2838_v62  ;;  %v521_v23 = vrot.slane %v3013_v35, 6  ;;  %4519 = vst [vmem:[#allocation13_spill] sm:$0xff] %v3057_v31 }
  0xf8   :  { %v2451_v44 = vpop.f32.mrb[14].mxu0  ;;  %v3042_v49 = vadd.f32 %v727_v24, %v711_v40  ;;  %v575_v7 = vsel %vm531_vm3, %v551_v43, %v552_v36  ;;  %v3050_v29 = vsub.f32 %v646_v38, %v662_v13  ;;  %v725_v20 = vmul.f32 %v578_v63, %v2835_v59 }
  0xf9   :  { %273 = vst.msk [vmem:[#allocation4 + $0x78] sm:$0xff] %vm257_vm2, %v2451_v44  ;;  %v2479_v50 = vpop.f32.mrb[14].mxu1  ;;  %v248_v60 = vpop.f32.mrb[15].mxu0  ;;  %v3052_v32 = vsub.f32 %v645_v11, %v661_v27  ;;  %v713_v24 = vadd.f32 %v697_v4, %v2956_v10  ;;  %v729_v40 = vmul.f32 %v574_v54, %v2835_v59  ;;  %v3062_v43 = vmul.f32 %v542_v34, %v2835_v59  ;;  %v474_v27 = vld [vmem:[#allocation4 + $0x40] sm:$0xff] }
  0xfa   :  { %436 = vst.msk [vmem:[#allocation5 + $0x78] sm:$0xff] %vm257_vm2, %v2479_v50  ;;  %272 = vst.msk [vmem:[#allocation4 + $0x70] sm:$0xff] %vm257_vm2, %v248_v60  ;;  %v412_v30 = vpop.f32.mrb[15].mxu1  ;;  %v555_v36 = vrot.slane %v3039_v51, 6  ;;  %v540_v38 = vsel %vm531_vm3, %v521_v23, %v522_v15  ;;  %v554_v63 = vrot.slane %v488_v22, 6  ;;  %v3068_v13 = vadd.f32 %v725_v20, %v709_v5  ;;  %v3076_v44 = vld [vmem:[#allocation5 + $0x40] sm:$0xff] }
  0xfb   :  { %4520 = vst [vmem:[#allocation14_spill] sm:$0xff] %v3062_v43  ;;  %435 = vst.msk [vmem:[#allocation5 + $0x70] sm:$0xff] %vm257_vm2, %v412_v30  ;;  %v712_v11 = vadd.f32 %v696_v37, %v2959_v12  ;;  %v541_v34 = vsel %vm531_vm3, %v520_v9, %v521_v23  ;;  %v3079_v50 = vadd.f32 %v632_v0, %v2916_v56  ;;  %v524_v5 = vrot.slane %v3057_v31, 6  ;;  %v3088_v12 = vld [vmem:[#allocation4 + $0x58] sm:$0xff]  ;;  %v3090_v37 = vld [vmem:[#allocation4 + $0x50] sm:$0xff] }
  0xfc   :  { %4521 = vst [vmem:[#allocation15_spill] sm:$0xff] %v3076_v44  ;;  %v3082_v60 = vmul.f32 %v575_v7, %v2838_v62  ;;  %v3085_v20 = vmul.f32 %v574_v54, %v2838_v62  ;;  %v728_v23 = vmul.f32 %v575_v7, %v2835_v59  ;;  %v3094_v30 = vadd.f32 %v729_v40, %v713_v24  ;;  %v3101_v1 = vld [vmem:[#allocation5 + $0x50] sm:$0xff]  ;;  %v3106_v9 = vld [vmem:[#allocation5 + $0x48] sm:$0xff] }
  0xfd   :  { %v699_v56 = vmul.f32 %v540_v38, %v2838_v62  ;;  %v572_v0 = vsel %vm531_vm3, %v554_v63, %v555_v36  ;;  %v698_v54 = vmul.f32 %v541_v34, %v2838_v62  ;;  %v523_v4 = vrot.slane %v474_v27, 6  ;;  %4523 = vst [vmem:[#allocation17_spill] sm:$0xff] %v3101_v1  ;;  %4524 = vst [vmem:[#allocation18_spill] sm:$0xff] %v3106_v9 }
  0xfe   :  { %4522 = vst [vmem:[#allocation16_spill] sm:$0xff] %v3085_v20  ;;  %v3104_v31 = vadd.f32 %v728_v23, %v712_v11  ;;  %v526_v7 = vrot.slane %v3088_v12, 6  ;;  %v525_v24 = vrot.slane %v3090_v37, 6  ;;  %v634_v40 = vmul.f32 %v541_v34, %v2835_v59 }
  0xff   :  { %v573_v33 = vsel %vm531_vm3, %v4525_v41, %v554_v63  ;;  %v3118_v61 = vsel %vm531_vm3, %v523_v4, %v524_v5  ;;  %v539_v11 = vsel %vm531_vm3, %v522_v15, %v523_v4  ;;  %v715_v12 = vadd.f32 %v699_v56, %v3039_v51 }
 0x100   :  { %4526 = vst [vmem:[#allocation19_spill] sm:$0xff] %v3118_v61  ;;  %v731_v23 = vmul.f32 %v572_v0, %v2835_v59  ;;  %v700_v20 = vmul.f32 %v539_v11, %v2838_v62  ;;  %v3127_v10 = vmul.f32 %v540_v38, %v2835_v59  ;;  %v714_v43 = vadd.f32 %v698_v54, %v488_v22 }
 0x101   :  { %v4528_v63 = vrot.slane %v3076_v44, 6  ;;  %v636_v15 = vmul.f32 %v539_v11, %v2835_v59  ;;  %v701_v51 = vmul.f32 %v3118_v61, %v2838_v62  ;;  %v3141_v4 = vsel %vm531_vm3, %v525_v24, %v526_v7  ;;  %v481_v11 = vld [vmem:[#allocation4 + $0x78] sm:$0xff]  ;;  %v480_v38 = vld [vmem:[#allocation4 + $0x70] sm:$0xff] }
 0x102   :  { %4527 = vst [vmem:[#allocation20_spill] sm:$0xff] %v3127_v10  ;;  %4530 = vst [vmem:[#allocation22_spill] sm:$0xff] %v3141_v4  ;;  %v537_v22 = vsel %vm531_vm3, %v524_v5, %v525_v24  ;;  %v3147_v56 = vadd.f32 %v634_v40, %v3013_v35  ;;  %v716_v54 = vadd.f32 %v700_v20, %v3076_v44  ;;  %v4532_v5 = vrot.slane %v3101_v1, 6  ;;  %v3167_v40 = vld [vmem:[#allocation4 + $0x60] sm:$0xff] }
 0x103   :  { %v3134_v55 = vsel %vm531_vm3, %v555_v36, %v4528_v63  ;;  %v730_v36 = vmul.f32 %v573_v33, %v2835_v59  ;;  %v497_v63 = vld [vmem:[#allocation5 + $0x78] sm:$0xff]  ;;  %v3152_v41 = vmul.f32 %v573_v33, %v2838_v62  ;;  %v3155_v34 = vmul.f32 %v572_v0, %v2838_v62  ;;  %4535 = vst [vmem:[#allocation25_spill] sm:$0xff] %v3167_v40 }
 0x104   :  { %4529 = vst [vmem:[#allocation21_spill] sm:$0xff] %v3134_v55  ;;  %v3157_v61 = vadd.f32 %v731_v23, %v715_v12  ;;  %v4533_v24 = vrot.slane %v3106_v9, 6  ;;  %v732_v33 = vmul.f32 %v3134_v55, %v2835_v59  ;;  %v638_v0 = vmul.f32 %v537_v22, %v2835_v59  ;;  %v3176_v23 = vld [vmem:[#allocation4 + $0x68] sm:$0xff] }
 0x105   :  { %4531 = vst [vmem:[#allocation23_spill] sm:$0xff] %v3155_v34  ;;  %v3169_v20 = vadd.f32 %v730_v36, %v714_v43  ;;  %v703_v12 = vmul.f32 %v3141_v4, %v2838_v62  ;;  %4536 = vst [vmem:[#allocation26_spill] sm:$0xff] %v3176_v23  ;;  %v3179_v44 = vadd.f32 %v636_v15, %v474_v27  ;;  %v3184_v43 = vld [vmem:[#allocation5 + $0x60] sm:$0xff]  ;;  %v530_v36 = vrot.slane %v481_v11, 6  ;;  %v3196_v27 = vld [vmem:[#allocation5 + $0x58] sm:$0xff] }
 0x106   :  { %v3165_v35 = vsel %vm531_vm3, %v4533_v24, %v4532_v5  ;;  %v3182_v5 = vadd.f32 %v701_v51, %v3106_v9  ;;  %4539 = vst [vmem:[#allocation29_spill] sm:$0xff] %v3184_v43  ;;  %v563_v24 = vrot.slane %v497_v63, 6  ;;  %v3186_v55 = vadd.f32 %v732_v33, %v716_v54  ;;  %4542 = vst [vmem:[#allocation32_spill] sm:$0xff] %v3196_v27 }
 0x107   :  { %4534 = vst [vmem:[#allocation24_spill] sm:$0xff] %v3165_v35  ;;  %4537 = vst [vmem:[#allocation27_spill] sm:$0xff] %v3179_v44  ;;  %v3189_v34 = vmul.f32 %v537_v22, %v2838_v62  ;;  %v3193_v4 = vmul.f32 %v3165_v35, %v2835_v59  ;;  %v4543_v51 = vrot.slane %v2961_v14, 6  ;;  %v4544_v54 = vrot.slane %v2976_v21, 6  ;;  %v3216_v44 = vld [vmem:[#allocation5 + $0x70] sm:$0xff] }
 0x108   :  { %4538 = vst [vmem:[#allocation28_spill] sm:$0xff] %v3182_v5  ;;  %4540 = vst [vmem:[#allocation30_spill] sm:$0xff] %v3186_v55  ;;  %v529_v33 = vrot.slane %v480_v38, 6  ;;  %v3208_v35 = vadd.f32 %v638_v0, %v3090_v37  ;;  %v3211_v10 = vadd.f32 %v703_v12, %v3196_v27  ;;  %v4548_v0 = vrot.slane %v3167_v40, 6 }
 0x109   :  { %4541 = vst [vmem:[#allocation31_spill] sm:$0xff] %v3193_v4  ;;  %v547_v5 = vsel %vm531_vm3, %v530_v36, %v4543_v51  ;;  %v579_v22 = vsel %vm531_vm3, %v563_v24, %v4544_v54  ;;  %4547 = vst [vmem:[#allocation35_spill] sm:$0xff] %v3216_v44 }
 0x10a   :  { %4545 = vst [vmem:[#allocation33_spill] sm:$0xff] %v3208_v35  ;;  %4546 = vst [vmem:[#allocation34_spill] sm:$0xff] %v3211_v10  ;;  %v596_v15 = vsel %vm580_vm4, %v547_v5, 0.0  ;;  %v612_v38 = vsel %vm580_vm4, %v579_v22, 0.0  ;;  %v532_v37 = vsel %vm531_vm3, %v529_v33, %v530_v36  ;;  %v3228_v12 = vsel %vm531_vm3, %v526_v7, %v4548_v0 }
 0x10b   :  { %v628_v51 = vmul.f32 %v596_v15, %v2835_v59  ;;  %v692_v4 = vmul.f32 %v596_v15, %v2838_v62  ;;  %v724_v5 = vmul.f32 %v612_v38, %v2835_v59  ;;  %v643_v54 = vmul.f32 %v532_v37, %v2835_v59 }
 0x10c   :  { %v707_v9 = vmul.f32 %v532_v37, %v2838_v62  ;;  %v4549_v22 = vrot.slane %v3176_v23, 6  ;;  %v4462_v10 = vrot.slane %v3216_v44, 6  ;;  %v660_v37 = vmul.f32 %v612_v38, %v2838_v62 }
 0x10d   :  { %v708_v15 = vadd.f32 %v692_v4, %v2976_v21  ;;  %v644_v7 = vadd.f32 %v628_v51, %v2961_v14  ;;  %v659_v0 = vadd.f32 %v643_v54, %v481_v11  ;;  %v763_v4 = vrot.slane %v3050_v29, 4 }
 0x10e   :  { %v3239_v36 = vsel %vm531_vm3, %v4549_v22, %v529_v33  ;;  %v723_v35 = vadd.f32 %v707_v9, %v497_v63  ;;  %v564_v21 = vsel %vm531_vm3, %v4462_v10, %v563_v24  ;;  %v4551_v33 = vrot.slane %v3028_v25, 4 }
 0x10f   :  { %4550 = vst [vmem:[#allocation36_spill] sm:$0xff] %v3239_v36  ;;  %v706_v40 = vmul.f32 %v3239_v36, %v2838_v62  ;;  %v740_v55 = vadd.f32 %v724_v5, %v708_v15  ;;  %v4552_v22 = vrot.slane %v3068_v13, 4  ;;  %v675_v9 = vmul.f32 %v564_v21, %v2838_v62 }
 0x110   :  { %v739_v63 = vmul.f32 %v564_v21, %v2835_v59  ;;  %v676_v51 = vsub.f32 %v644_v7, %v660_v37  ;;  %v4554_v24 = vrot.slane %v3052_v32, 4  ;;  %v4557_v21 = vrot.slane %v3068_v13, 4 }
 0x111   :  { %v823_v14 = vsel %vm777_vm5, %v4552_v22, %v4551_v33  ;;  %v3259_v11 = vadd.f32 %v706_v40, %v3216_v44  ;;  %v794_v38 = vrot.slane %v740_v55, 4  ;;  %v3268_v10 = vsub.f32 %v659_v0, %v675_v9 }
 0x112   :  { %v791_v5 = vsel %vm777_vm5, %v4554_v24, %v763_v4  ;;  %v920_v54 = vmul.f32 %v2884_v45, %v823_v14  ;;  %v984_v15 = vmul.f32 %v2877_v39, %v823_v14  ;;  %v3270_v33 = vadd.f32 %v739_v63, %v723_v35 }
 0x113   :  { %4553 = vst [vmem:[#allocation37_spill] sm:$0xff] %v3259_v11  ;;  %4555 = vst [vmem:[#allocation38_spill] sm:$0xff] %v3268_v10  ;;  %v761_v22 = vrot.slane %v676_v51, 4  ;;  %v882_v40 = vmul.f32 %v2877_v39, %v791_v5  ;;  %v824_v7 = vsel %vm777_vm5, %v794_v38, %v4557_v21  ;;  %v952_v37 = vmul.f32 %v2884_v45, %v791_v5 }
 0x114   :  { %4556 = vst [vmem:[#allocation39_spill] sm:$0xff] %v3270_v33  ;;  %v647_v24 = vadd.f32 %v3018_v8, %v2861_v26  ;;  %v4465_v0 = vrot.slane %v3268_v10, 4  ;;  %v4558_v35 = vrot.slane %v3052_v32, 4  ;;  %v4466_v9 = vrot.slane %v3270_v33, 4 }
 0x115   :  { %v919_v63 = vmul.f32 %v2884_v45, %v824_v7  ;;  %v983_v36 = vmul.f32 %v2877_v39, %v824_v7  ;;  %v898_v26 = vadd.f32 %v882_v40, %v3050_v29  ;;  %v968_v11 = vadd.f32 %v952_v37, %v3028_v25 }
 0x116   :  { %v792_v14 = vsel %vm777_vm5, %v761_v22, %v4558_v35  ;;  %v793_v8 = vsel %vm777_vm5, %v4465_v0, %v761_v22  ;;  %v825_v35 = vsel %vm777_vm5, %v4466_v9, %v794_v38  ;;  %v3302_v44 = vsub.f32 %v647_v24, %v3022_v16 }
 0x117   :  { %v881_v21 = vmul.f32 %v2877_v39, %v792_v14  ;;  %v951_v5 = vmul.f32 %v2884_v45, %v792_v14  ;;  %v842_v7 = vsel %vm826_vm6, %v793_v8, 0.0  ;;  %v858_v29 = vsel %vm826_vm6, %v825_v35, 0.0 }
 0x118   :  { %v880_v14 = vmul.f32 %v2877_v39, %v842_v7  ;;  %v918_v0 = vmul.f32 %v2884_v45, %v858_v29  ;;  %v950_v38 = vmul.f32 %v2884_v45, %v842_v7  ;;  %v982_v37 = vmul.f32 %v2877_v39, %v858_v29 }
 0x119   :  { %v897_v40 = vadd.f32 %v881_v21, %v3052_v32  ;;  %v967_v22 = vadd.f32 %v951_v5, %v3068_v13  ;;  %v3314_v9 = vsub.f32 %v898_v26, %v920_v54  ;;  %v3316_v8 = vadd.f32 %v984_v15, %v968_v11 }
 0x11a   :  { %v896_v33 = vadd.f32 %v880_v14, %v676_v51  ;;  %v966_v35 = vadd.f32 %v950_v38, %v740_v55  ;;  %v4469_v32 = vrot.slane %v3302_v44, 4  ;;  %v4559_v13 = vrot.slane %v3042_v49, 4 }
 0x11b   :  { %v935_v16 = vsub.f32 %v897_v40, %v919_v63  ;;  %v999_v24 = vadd.f32 %v983_v36, %v967_v22  ;;  %v4560_v21 = vrot.slane %v3028_v25, 4  ;;  %v1076_v40 = vmul.f32 %v2888_v46, %v3314_v9 }
 0x11c   :  { %v934_v54 = vsub.f32 %v896_v33, %v918_v0  ;;  %v998_v51 = vadd.f32 %v982_v37, %v966_v35  ;;  %v790_v55 = vsel %vm777_vm5, %v763_v4, %v4469_v32 }
 0x11d   :  { %v822_v5 = vsel %vm777_vm5, %v4560_v21, %v4559_v13  ;;  %v1075_v7 = vmul.f32 %v2888_v46, %v935_v16  ;;  %v1113_v63 = vmul.f32 %v2898_v52, %v999_v24  ;;  %v1145_v36 = vmul.f32 %v2898_v52, %v935_v16 }
 0x11e   :  { %v1177_v11 = vmul.f32 %v2888_v46, %v999_v24  ;;  %v921_v25 = vmul.f32 %v2884_v45, %v822_v5  ;;  %v883_v29 = vmul.f32 %v2877_v39, %v790_v55  ;;  %v1074_v22 = vmul.f32 %v2888_v46, %v934_v54 }
 0x11f   :  { %v1091_v15 = vadd.f32 %v1075_v7, %v3314_v9  ;;  %v1161_v26 = vadd.f32 %v1145_v36, %v3316_v8  ;;  %v1089_v33 = vadd.f32 %v2935_v2, %v934_v54  ;;  %v1144_v0 = vmul.f32 %v2898_v52, %v934_v54 }
 0x120   :  { %v1112_v14 = vmul.f32 %v2898_v52, %v998_v51  ;;  %v1159_v4 = vadd.f32 %v2938_v3, %v998_v51  ;;  %v1176_v38 = vmul.f32 %v2888_v46, %v998_v51  ;;  %v1090_v21 = vadd.f32 %v1074_v22, %v935_v16 }
 0x121   :  { %v3345_v37 = vsub.f32 %v1091_v15, %v1113_v63  ;;  %v3347_v35 = vadd.f32 %v1177_v11, %v1161_v26  ;;  %v1127_v13 = vsub.f32 %v1089_v33, %v2938_v3  ;;  %v1160_v7 = vadd.f32 %v1144_v0, %v999_v24 }
 0x122   :  { %v899_v36 = vadd.f32 %v883_v29, %v3302_v44  ;;  %v1191_v32 = vadd.f32 %v1159_v4, %v2935_v2  ;;  %v1114_v54 = vmul.f32 %v2898_v52, %v3316_v8  ;;  %v953_v10 = vmul.f32 %v2884_v45, %v790_v55 }
 0x123   :  { %v985_v23 = vmul.f32 %v2877_v39, %v822_v5  ;;  %v1282_v63 = vadd.f32 %v2947_v6, %v1127_v13  ;;  %v1128_v51 = vsub.f32 %v1090_v21, %v1112_v14  ;;  %v3357_v11 = vadd.f32 %v1176_v38, %v1160_v7 }
 0x124   :  { %v1268_v3 = vmul.f32 %v2902_v42, %v1127_v13  ;;  %v1352_v16 = vadd.f32 %v2950_v53, %v1191_v32  ;;  %v1306_v24 = vmul.f32 %v2906_v48, %v1191_v32  ;;  %v1338_v2 = vmul.f32 %v2906_v48, %v1127_v13 }
 0x125   :  { %v1370_v15 = vmul.f32 %v2902_v42, %v1191_v32  ;;  %v3365_v26 = vsub.f32 %v1282_v63, %v2950_v53  ;;  %v1283_v5 = vadd.f32 %v2947_v6, %v1128_v51  ;;  %v1353_v55 = vadd.f32 %v2950_v53, %v3357_v11 }
 0x126   :  { %v1284_v29 = vadd.f32 %v1268_v3, %v3345_v37  ;;  %v3372_v22 = vadd.f32 %v1352_v16, %v2947_v6  ;;  %v1354_v33 = vadd.f32 %v1338_v2, %v3347_v35  ;;  %v3375_v0 = vsub.f32 %v899_v36, %v921_v25 }
 0x127   :  { %v1269_v14 = vmul.f32 %v2902_v42, %v1128_v51  ;;  %v1475_v32 = vadd.f32 %v2967_v17, %v3365_v26  ;;  %v3381_v4 = vsub.f32 %v1283_v5, %v2950_v53  ;;  %v3384_v38 = vadd.f32 %v1353_v55, %v2947_v6 }
 0x128   :  { %v3386_v13 = vsub.f32 %v1284_v29, %v1306_v24  ;;  %v1545_v21 = vadd.f32 %v2970_v18, %v3372_v22  ;;  %v3390_v7 = vadd.f32 %v1370_v15, %v1354_v33  ;;  %v1092_v25 = vadd.f32 %v1076_v40, %v3375_v0 }
 0x129   :  { %v1307_v36 = vmul.f32 %v2906_v48, %v3357_v11  ;;  %v3396_v63 = vsub.f32 %v1475_v32, %v2970_v18  ;;  %v1476_v53 = vadd.f32 %v2967_v17, %v3381_v4  ;;  %v1546_v6 = vadd.f32 %v2970_v18, %v3384_v38 }
 0x12a   :  { %v1477_v3 = vadd.f32 %v2967_v17, %v3386_v13  ;;  %v3405_v16 = vadd.f32 %v1545_v21, %v2967_v17  ;;  %v1547_v40 = vadd.f32 %v2970_v18, %v3390_v7  ;;  %v3409_v24 = vsub.f32 %v1092_v25, %v1114_v54 }
 0x12b   :  { %4561 = vst [vmem:[#allocation40_spill] sm:$0xff] %v3396_v63  ;;  %v969_v2 = vadd.f32 %v953_v10, %v3042_v49  ;;  %v1668_v15 = vadd.f32 %v2973_v19, %v3396_v63  ;;  %v3415_v5 = vsub.f32 %v1476_v53, %v2970_v18  ;;  %v3418_v55 = vadd.f32 %v1546_v6, %v2967_v17 }
 0x12c   :  { %4562 = vst [vmem:[#allocation41_spill] sm:$0xff] %v3405_v16  ;;  %v3421_v29 = vsub.f32 %v1477_v3, %v2970_v18  ;;  %v1738_v33 = vadd.f32 %v2981_v28, %v3405_v16  ;;  %v3426_v54 = vadd.f32 %v1547_v40, %v2967_v17  ;;  %v1285_v10 = vadd.f32 %v1269_v14, %v3409_v24 }
 0x12d   :  { %4563 = vst [vmem:[#allocation42_spill] sm:$0xff] %v3415_v5  ;;  %4564 = vst [vmem:[#allocation43_spill] sm:$0xff] %v3418_v55  ;;  %v1001_v32 = vadd.f32 %v985_v23, %v969_v2  ;;  %v1706_v21 = vsub.f32 %v1668_v15, %v2981_v28  ;;  %v1669_v25 = vadd.f32 %v2973_v19, %v3415_v5 }
 0x12e   :  { %4565 = vst [vmem:[#allocation44_spill] sm:$0xff] %v3421_v29  ;;  %4566 = vst [vmem:[#allocation45_spill] sm:$0xff] %v3426_v54  ;;  %v1739_v53 = vadd.f32 %v2981_v28, %v3418_v55  ;;  %v1670_v6 = vadd.f32 %v2973_v19, %v3421_v29  ;;  %v1770_v3 = vadd.f32 %v1738_v33, %v2973_v19  ;;  %v4573_v55 = vld [vmem:[#allocation14_spill] sm:$0xff] }
 0x12f   :  { %v1740_v40 = vadd.f32 %v2981_v28, %v3426_v54  ;;  %v3439_v16 = vsub.f32 %v1285_v10, %v1307_v36  ;;  %v1146_v23 = vmul.f32 %v2898_v52, %v3314_v9  ;;  %2488 = vmatprep.mubr.msk.f32.mxu0 %vm257_vm2, %v1706_v21  ;;  %v1707_v14 = vsub.f32 %v1669_v25, %v2981_v28 }
 0x130   :  { %v1771_v2 = vadd.f32 %v1739_v53, %v2973_v19  ;;  %v1708_v15 = vsub.f32 %v1670_v6, %v2981_v28  ;;  %v1178_v29 = vmul.f32 %v2888_v46, %v3316_v8  ;;  %2520 = vmatprep.mubr.msk.f32.mxu1 %vm257_vm2, %v1770_v3  ;;  %v1339_v9 = vmul.f32 %v2906_v48, %v1128_v51 }
 0x131   :  { %v1772_v33 = vadd.f32 %v1740_v40, %v2973_v19  ;;  %v1478_v36 = vadd.f32 %v2967_v17, %v3439_v16  ;;  %v1162_v10 = vadd.f32 %v1146_v23, %v1001_v32  ;;  %v4477_v21 = vrot.slane %v3196_v27, 6  ;;  %2489 = vmatmul.mubr.msk.f32.vlgmr.msra.gmra.mrb[16].mxu0 %vm257_vm2, %v1707_v14  ;;  %v4572_v27 = vld [vmem:[#allocation9_spill] sm:$0xff] }
 0x132   :  { %v3457_v25 = vadd.f32 %v3189_v34, %v3101_v1  ;;  %2521 = vmatmul.mubr.msk.f32.vlgmr.msra.gmra.mrb[16].mxu1 %vm257_vm2, %v1771_v2  ;;  %v680_v8 = vsub.f32 %v3079_v50, %v3082_v60  ;;  %v4567_v53 = vrot.slane %v3104_v31, 4  ;;  %v4568_v6 = vrot.slane %v3042_v49, 4  ;;  %2491 = vmatprep.mubr.msk.f32.mxu0 %vm257_vm2, %v1708_v15 }
 0x133   :  { %v3472_v34 = vmul.f32 %v3228_v12, %v2835_v59  ;;  %2523 = vmatprep.mubr.msk.f32.mxu1 %vm257_vm2, %v1772_v33  ;;  %v3477_v40 = vsub.f32 %v1478_v36, %v2970_v18  ;;  %v3479_v50 = vadd.f32 %v1178_v29, %v1162_v10  ;;  %v4570_v49 = vrot.slane %v3184_v43, 6 }
 0x134   :  { %v821_v51 = vsel %vm777_vm5, %v4568_v6, %v4567_v53  ;;  %v3491_v23 = vmul.f32 %v3228_v12, %v2838_v62  ;;  %v1371_v14 = vmul.f32 %v2902_v42, %v3357_v11  ;;  %v765_v2 = vrot.slane %v680_v8, 4 }
 0x135   :  { %4569 = vst [vmem:[#allocation46_spill] sm:$0xff] %v3477_v40  ;;  %v3487_v60 = vsel %vm531_vm3, %v4477_v21, %v4570_v49  ;;  %v1671_v29 = vadd.f32 %v2973_v19, %v3477_v40  ;;  %v1355_v15 = vadd.f32 %v1339_v9, %v3479_v50  ;;  %v922_v33 = vmul.f32 %v2884_v45, %v821_v51 }
 0x136   :  { %v4571_v10 = vrot.slane %v3302_v44, 4  ;;  %v1077_v12 = vmul.f32 %v2888_v46, %v3375_v0  ;;  %v1115_v11 = vmul.f32 %v2898_v52, %v1001_v32  ;;  %v1270_v44 = vmul.f32 %v2902_v42, %v3345_v37 }
 0x137   :  { %v1709_v49 = vsub.f32 %v1671_v29, %v2981_v28  ;;  %v3509_v21 = vadd.f32 %v1371_v14, %v1355_v15  ;;  %v1463_v36 = vmul.f32 %v2920_v57, %v3365_v26  ;;  %v1501_v6 = vmul.f32 %v2923_v58, %v3372_v22 }
 0x138   :  { %v789_v53 = vsel %vm777_vm5, %v4571_v10, %v765_v2  ;;  %v1308_v10 = vmul.f32 %v2906_v48, %v3347_v35  ;;  %v1147_v40 = vmul.f32 %v2898_v52, %v3375_v0  ;;  %v1179_v54 = vmul.f32 %v2888_v46, %v1001_v32 }
 0x139   :  { %v884_v9 = vmul.f32 %v2877_v39, %v789_v53  ;;  %v954_v3 = vmul.f32 %v2884_v45, %v789_v53  ;;  %2492 = vmatmul.mubr.msk.f32.gmra.mrb[18].mxu0 %vm257_vm2, %v1709_v49  ;;  %v1548_v14 = vadd.f32 %v2970_v18, %v3509_v21  ;;  %v986_v53 = vmul.f32 %v2877_v39, %v821_v51 }
 0x13a   :  { %v1340_v1 = vmul.f32 %v2906_v48, %v3345_v37  ;;  %v649_v5 = vadd.f32 %v4573_v55, %v4572_v27  ;;  %v4576_v51 = vrot.slane %v3104_v31, 4  ;;  %v1372_v32 = vmul.f32 %v2902_v42, %v3347_v35 }
 0x13b   :  { %v900_v29 = vadd.f32 %v884_v9, %v680_v8  ;;  %v970_v15 = vadd.f32 %v954_v3, %v3104_v31  ;;  %v3534_v49 = vadd.f32 %v1548_v14, %v2967_v17  ;;  %v4575_v3 = vrot.slane %v3094_v30, 4  ;;  %v4577_v17 = vld [vmem:[#allocation16_spill] sm:$0xff] }
 0x13c   :  { %v1533_v37 = vmul.f32 %v2923_v58, %v3365_v26  ;;  %v1565_v27 = vmul.f32 %v2920_v57, %v3372_v22  ;;  %v681_v55 = vsub.f32 %v649_v5, %v4577_v17  ;;  %v1271_v31 = vmul.f32 %v2902_v42, %v3409_v24 }
 0x13d   :  { %4574 = vst [vmem:[#allocation9_spill] sm:$0xff] %v3534_v49  ;;  %v938_v18 = vsub.f32 %v900_v29, %v922_v33  ;;  %v1002_v8 = vadd.f32 %v986_v53, %v970_v15  ;;  %v820_v0 = vsel %vm777_vm5, %v4576_v51, %v4575_v3  ;;  %v1741_v33 = vadd.f32 %v2981_v28, %v3534_v49 }
 0x13e   :  { %v766_v29 = vrot.slane %v681_v55, 4  ;;  %v923_v15 = vmul.f32 %v2884_v45, %v820_v0  ;;  %v1309_v35 = vmul.f32 %v2906_v48, %v3479_v50  ;;  %v3558_v26 = vmul.f32 %v2920_v57, %v3381_v4 }
 0x13f   :  { %v1093_v9 = vadd.f32 %v1077_v12, %v938_v18  ;;  %v1163_v14 = vadd.f32 %v1147_v40, %v1002_v8  ;;  %v1773_v22 = vadd.f32 %v1741_v33, %v2973_v19  ;;  %v3567_v40 = vmul.f32 %v2923_v58, %v3384_v38 }
 0x140   :  { %v788_v12 = vsel %vm777_vm5, %v765_v2, %v766_v29  ;;  %v1078_v3 = vmul.f32 %v2888_v46, %v938_v18  ;;  %v1116_v51 = vmul.f32 %v2898_v52, %v1002_v8  ;;  %v987_v17 = vmul.f32 %v2877_v39, %v820_v0 }
 0x141   :  { %v3561_v5 = vsub.f32 %v1093_v9, %v1115_v11  ;;  %v3563_v53 = vadd.f32 %v1179_v54, %v1163_v14  ;;  %2524 = vmatmul.mubr.msk.f32.gmra.mrb[18].mxu1 %vm257_vm2, %v1773_v22  ;;  %v885_v33 = vmul.f32 %v2877_v39, %v788_v12  ;;  %v955_v9 = vmul.f32 %v2884_v45, %v788_v12 }
 0x142   :  { %v1148_v14 = vmul.f32 %v2898_v52, %v938_v18  ;;  %v1180_v2 = vmul.f32 %v2888_v46, %v1002_v8  ;;  %v1341_v49 = vmul.f32 %v2906_v48, %v3409_v24  ;;  %v3585_v0 = vsub.f32 %v3147_v56, %v3152_v41 }
 0x143   :  { %v1286_v11 = vadd.f32 %v1270_v44, %v3561_v5  ;;  %v1356_v54 = vadd.f32 %v1340_v1, %v3563_v53  ;;  %v901_v1 = vadd.f32 %v885_v33, %v681_v55  ;;  %v971_v63 = vadd.f32 %v955_v9, %v3094_v30 }
 0x144   :  { %v1373_v12 = vmul.f32 %v2902_v42, %v3479_v50  ;;  %v1534_v18 = vmul.f32 %v2923_v58, %v3381_v4  ;;  %v767_v8 = vrot.slane %v3585_v0, 4  ;;  %v4578_v24 = vrot.slane %v3169_v20, 4 }
 0x145   :  { %v3587_v22 = vsub.f32 %v1286_v11, %v1308_v10  ;;  %v3589_v44 = vadd.f32 %v1372_v32, %v1356_v54  ;;  %v4579_v41 = vrot.slane %v3094_v30, 4  ;;  %v939_v55 = vsub.f32 %v901_v1, %v923_v15 }
 0x146   :  { %v1003_v11 = vadd.f32 %v987_v17, %v971_v63  ;;  %v1566_v50 = vmul.f32 %v2920_v57, %v3384_v38  ;;  %v787_v4 = vsel %vm777_vm5, %v766_v29, %v767_v8  ;;  %v1272_v54 = vmul.f32 %v2902_v42, %v3561_v5 }
 0x147   :  { %v819_v56 = vsel %vm777_vm5, %v4579_v41, %v4578_v24  ;;  %v1479_v10 = vadd.f32 %v1463_v36, %v3587_v22  ;;  %v1549_v32 = vadd.f32 %v1533_v37, %v3589_v44  ;;  %v1310_v30 = vmul.f32 %v2906_v48, %v3563_v53 }
 0x148   :  { %v1094_v36 = vadd.f32 %v1078_v3, %v939_v55  ;;  %v1164_v37 = vadd.f32 %v1148_v14, %v1003_v11  ;;  %v886_v63 = vmul.f32 %v2877_v39, %v787_v4  ;;  %v924_v15 = vmul.f32 %v2884_v45, %v819_v56 }
 0x149   :  { %v3613_v33 = vsub.f32 %v1479_v10, %v1501_v6  ;;  %v3615_v9 = vadd.f32 %v1565_v27, %v1549_v32  ;;  %v1465_v38 = vmul.f32 %v2920_v57, %v3386_v13  ;;  %v956_v29 = vmul.f32 %v2884_v45, %v787_v4 }
 0x14a   :  { %v3626_v1 = vsub.f32 %v1094_v36, %v1116_v51  ;;  %v3628_v27 = vadd.f32 %v1180_v2, %v1164_v37  ;;  %v902_v3 = vadd.f32 %v886_v63, %v3585_v0  ;;  %v1503_v14 = vmul.f32 %v2923_v58, %v3390_v7 }
 0x14b   :  { %4580 = vst [vmem:[#allocation14_spill] sm:$0xff] %v3613_v33  ;;  %4581 = vst [vmem:[#allocation16_spill] sm:$0xff] %v3615_v9  ;;  %v1672_v17 = vadd.f32 %v2973_v19, %v3613_v33  ;;  %v1742_v6 = vadd.f32 %v2981_v28, %v3615_v9  ;;  %v972_v24 = vadd.f32 %v956_v29, %v3169_v20  ;;  %v4582_v29 = vld [vmem:[#allocation12_spill] sm:$0xff] }
 0x14c   :  { %v988_v41 = vmul.f32 %v2877_v39, %v819_v56  ;;  %v1287_v4 = vadd.f32 %v1271_v31, %v3626_v1  ;;  %v1357_v51 = vadd.f32 %v1341_v49, %v3628_v27  ;;  %v940_v36 = vsub.f32 %v902_v3, %v924_v15 }
 0x14d   :  { %v1710_v10 = vsub.f32 %v1672_v17, %v2981_v28  ;;  %v1774_v32 = vadd.f32 %v1742_v6, %v2973_v19  ;;  %v1079_v2 = vmul.f32 %v2888_v46, %v939_v55  ;;  %v1149_v0 = vmul.f32 %v2898_v52, %v939_v55  ;;  %v4583_v17 = vld [vmem:[#allocation20_spill] sm:$0xff] }
 0x14e   :  { %v1004_v37 = vadd.f32 %v988_v41, %v972_v24  ;;  %v3643_v63 = vsub.f32 %v1287_v4, %v1309_v35  ;;  %v3645_v56 = vadd.f32 %v1373_v12, %v1357_v51  ;;  %v651_v6 = vadd.f32 %v4583_v17, %v4582_v29  ;;  %v4584_v41 = vld [vmem:[#allocation23_spill] sm:$0xff] }
 0x14f   :  { %2494 = vmatprep.mubr.msk.f32.mxu0 %vm257_vm2, %v1710_v10  ;;  %2526 = vmatprep.mubr.msk.f32.mxu1 %vm257_vm2, %v1774_v32  ;;  %v1095_v31 = vadd.f32 %v1079_v2, %v940_v36  ;;  %v1117_v49 = vmul.f32 %v2898_v52, %v1003_v11  ;;  %v1181_v3 = vmul.f32 %v2888_v46, %v1003_v11  ;;  %v4585_v11 = vrot.slane %v3157_v61, 4 }
 0x150   :  { %v1165_v15 = vadd.f32 %v1149_v0, %v1004_v37  ;;  %v1480_v55 = vadd.f32 %v3558_v26, %v3643_v63  ;;  %v1550_v24 = vadd.f32 %v1534_v18, %v3645_v56  ;;  %v1342_v35 = vmul.f32 %v2906_v48, %v3561_v5 }
 0x151   :  { %v3657_v12 = vsub.f32 %v651_v6, %v4584_v41  ;;  %v3659_v10 = vsub.f32 %v1095_v31, %v1117_v49  ;;  %v1374_v4 = vmul.f32 %v2902_v42, %v3563_v53  ;;  %v4586_v51 = vrot.slane %v3169_v20, 4 }
 0x152   :  { %v3661_v32 = vadd.f32 %v1181_v3, %v1165_v15  ;;  %v3672_v18 = vsub.f32 %v1480_v55, %v3567_v40  ;;  %v3674_v5 = vadd.f32 %v1566_v50, %v1550_v24  ;;  %v1535_v2 = vmul.f32 %v2923_v58, %v3386_v13 }
 0x153   :  { %v818_v26 = vsel %vm777_vm5, %v4586_v51, %v4585_v11  ;;  %v768_v0 = vrot.slane %v3657_v12, 4  ;;  %v1288_v29 = vadd.f32 %v1272_v54, %v3659_v10  ;;  %v1567_v20 = vmul.f32 %v2920_v57, %v3390_v7  ;;  %v4590_v51 = vld [vmem:[#allocation31_spill] sm:$0xff] }
 0x154   :  { %4587 = vst [vmem:[#allocation12_spill] sm:$0xff] %v3672_v18  ;;  %4588 = vst [vmem:[#allocation20_spill] sm:$0xff] %v3674_v5  ;;  %v1358_v53 = vadd.f32 %v1342_v35, %v3661_v32  ;;  %v1080_v17 = vmul.f32 %v2888_v46, %v940_v36  ;;  %v1673_v40 = vadd.f32 %v2973_v19, %v3672_v18  ;;  %v4614_v18 = vld [vmem:[#allocation24_spill] sm:$0xff] }
 0x155   :  { %v1743_v50 = vadd.f32 %v2981_v28, %v3674_v5  ;;  %v786_v13 = vsel %vm777_vm5, %v767_v8, %v768_v0  ;;  %v925_v6 = vmul.f32 %v2884_v45, %v818_v26  ;;  %v3691_v31 = vsub.f32 %v1288_v29, %v1310_v30 }
 0x156   :  { %v3693_v54 = vadd.f32 %v1374_v4, %v1358_v53  ;;  %v887_v49 = vmul.f32 %v2877_v39, %v786_v13  ;;  %v957_v7 = vmul.f32 %v2884_v45, %v786_v13  ;;  %v1711_v15 = vsub.f32 %v1673_v40, %v2981_v28  ;;  %v4589_v4 = vld [vmem:[#allocation30_spill] sm:$0xff]  ;;  %v4591_v53 = vld [vmem:[#allocation25_spill] sm:$0xff] }
 0x157   :  { %v1775_v3 = vadd.f32 %v1743_v50, %v2973_v19  ;;  %v989_v55 = vmul.f32 %v2877_v39, %v818_v26  ;;  %v1150_v24 = vmul.f32 %v2898_v52, %v940_v36  ;;  %v1481_v8 = vadd.f32 %v1465_v38, %v3691_v31  ;;  %v4594_v13 = vld [vmem:[#allocation21_spill] sm:$0xff] }
 0x158   :  { %v1551_v35 = vadd.f32 %v1535_v2, %v3693_v54  ;;  %v903_v30 = vadd.f32 %v887_v49, %v3657_v12  ;;  %v973_v41 = vadd.f32 %v957_v7, %v3157_v61  ;;  %v4493_v11 = vrot.slane %v4589_v4, 4  ;;  %2495 = vmatmul.mubr.msk.f32.gmra.mrb[20].mxu0 %vm257_vm2, %v1711_v15 }
 0x159   :  { %v3708_v29 = vadd.f32 %v4590_v51, %v3457_v25  ;;  %v3712_v40 = vadd.f32 %v3472_v34, %v4591_v53  ;;  %v736_v36 = vmul.f32 %v3487_v60, %v2835_v59  ;;  %2527 = vmatmul.mubr.msk.f32.gmra.mrb[20].mxu1 %vm257_vm2, %v1775_v3  ;;  %v3718_v38 = vsub.f32 %v1481_v8, %v1503_v14  ;;  %v4595_v3 = vld [vmem:[#allocation27_spill] sm:$0xff] }
 0x15a   :  { %v3720_v12 = vadd.f32 %v1567_v20, %v1551_v35  ;;  %v941_v26 = vsub.f32 %v903_v30, %v925_v6  ;;  %v1005_v2 = vadd.f32 %v989_v55, %v973_v41  ;;  %v720_v25 = vadd.f32 %v3491_v23, %v3184_v43 }
 0x15b   :  { %4592 = vst [vmem:[#allocation23_spill] sm:$0xff] %v3718_v38  ;;  %v1118_v50 = vmul.f32 %v2898_v52, %v1004_v37  ;;  %v1182_v34 = vmul.f32 %v2888_v46, %v1004_v37  ;;  %v668_v49 = vmul.f32 %v4594_v13, %v2838_v62  ;;  %v1674_v7 = vadd.f32 %v2973_v19, %v3718_v38 }
 0x15c   :  { %4593 = vst [vmem:[#allocation30_spill] sm:$0xff] %v3720_v12  ;;  %v1744_v14 = vadd.f32 %v2981_v28, %v3720_v12  ;;  %v1096_v20 = vadd.f32 %v1080_v17, %v941_v26  ;;  %v1166_v15 = vadd.f32 %v1150_v24, %v1005_v2  ;;  %v1273_v6 = vmul.f32 %v2902_v42, %v3626_v1  ;;  %v4603_v12 = vld [vmem:[#allocation19_spill] sm:$0xff] }
 0x15d   :  { %v1311_v23 = vmul.f32 %v2906_v48, %v3628_v27  ;;  %v1343_v37 = vmul.f32 %v2906_v48, %v3626_v1  ;;  %v3739_v55 = vsub.f32 %v4595_v3, %v668_v49  ;;  %v1712_v8 = vsub.f32 %v1674_v7, %v2981_v28 }
 0x15e   :  { %v1776_v35 = vadd.f32 %v1744_v14, %v2973_v19  ;;  %v3743_v30 = vsub.f32 %v1096_v20, %v1118_v50  ;;  %v3745_v17 = vadd.f32 %v1182_v34, %v1166_v15  ;;  %v1466_v24 = vmul.f32 %v2920_v57, %v3439_v16 }
 0x15f   :  { %v1375_v41 = vmul.f32 %v2902_v42, %v3628_v27  ;;  %v1536_v1 = vmul.f32 %v2923_v58, %v3439_v16  ;;  %v4492_v51 = vrot.slane %v3739_v55, 4  ;;  %2497 = vmatprep.mubr.msk.f32.mxu0 %vm257_vm2, %v1712_v8  ;;  %v4596_v13 = vrot.slane %v3157_v61, 4 }
 0x160   :  { %2529 = vmatprep.mubr.msk.f32.mxu1 %vm257_vm2, %v1776_v35  ;;  %v1289_v50 = vadd.f32 %v1273_v6, %v3743_v30  ;;  %v1359_v34 = vadd.f32 %v1343_v37, %v3745_v17  ;;  %v3764_v49 = vadd.f32 %v736_v36, %v720_v25  ;;  %v1504_v16 = vmul.f32 %v2923_v58, %v3509_v21 }
 0x161   :  { %v817_v27 = vsel %vm777_vm5, %v4596_v13, %v4493_v11  ;;  %v1568_v7 = vmul.f32 %v2920_v57, %v3509_v21  ;;  %v785_v14 = vsel %vm777_vm5, %v768_v0, %v4492_v51  ;;  %v1081_v6 = vmul.f32 %v2888_v46, %v941_v26 }
 0x162   :  { %v3774_v20 = vsub.f32 %v1289_v50, %v1311_v23  ;;  %v3776_v15 = vadd.f32 %v1375_v41, %v1359_v34  ;;  %v888_v61 = vmul.f32 %v2877_v39, %v785_v14  ;;  %v958_v36 = vmul.f32 %v2884_v45, %v785_v14  ;;  %v4597_v34 = vld [vmem:[#allocation18_spill] sm:$0xff]  ;;  %v4599_v14 = vld [vmem:[#allocation15_spill] sm:$0xff] }
 0x163   :  { %v926_v25 = vmul.f32 %v2884_v45, %v817_v27  ;;  %v1274_v21 = vmul.f32 %v2902_v42, %v3659_v10  ;;  %v990_v37 = vmul.f32 %v2877_v39, %v817_v27  ;;  %v1119_v35 = vmul.f32 %v2898_v52, %v1005_v2 }
 0x164   :  { %v1482_v3 = vadd.f32 %v1466_v24, %v3774_v20  ;;  %v1552_v0 = vadd.f32 %v1536_v1, %v3776_v15  ;;  %v904_v23 = vadd.f32 %v888_v61, %v3739_v55  ;;  %v974_v8 = vadd.f32 %v958_v36, %v4589_v4 }
 0x165   :  { %v1312_v41 = vmul.f32 %v2906_v48, %v3661_v32  ;;  %v1151_v50 = vmul.f32 %v2898_v52, %v941_v26  ;;  %v4598_v13 = vrot.slane %v4597_v34, 6  ;;  %v4600_v51 = vrot.slane %v4599_v14, 6 }
 0x166   :  { %v3799_v27 = vsub.f32 %v1482_v3, %v1504_v16  ;;  %v3801_v1 = vadd.f32 %v1568_v7, %v1552_v0  ;;  %v942_v61 = vsub.f32 %v904_v23, %v926_v25  ;;  %v1006_v36 = vadd.f32 %v990_v37, %v974_v8  ;;  %v4604_v37 = vld [vmem:[#allocation13_spill] sm:$0xff]  ;;  %v4605_v3 = vld [vmem:[#allocation28_spill] sm:$0xff] }
 0x167   :  { %v570_v24 = vsel %vm531_vm3, %v4600_v51, %v4598_v13  ;;  %v1183_v11 = vmul.f32 %v2888_v46, %v1005_v2  ;;  %v637_v38 = vmul.f32 %v4603_v12, %v2835_v59  ;;  %v1467_v25 = vmul.f32 %v2920_v57, %v3587_v22 }
 0x168   :  { %4601 = vst [vmem:[#allocation31_spill] sm:$0xff] %v3799_v27  ;;  %4602 = vst [vmem:[#allocation25_spill] sm:$0xff] %v3801_v1  ;;  %v669_v26 = vmul.f32 %v570_v24, %v2838_v62  ;;  %v733_v34 = vmul.f32 %v570_v24, %v2835_v59  ;;  %v1675_v14 = vadd.f32 %v2973_v19, %v3799_v27 }
 0x169   :  { %v1745_v51 = vadd.f32 %v2981_v28, %v3801_v1  ;;  %v1097_v16 = vadd.f32 %v1081_v6, %v942_v61  ;;  %v1167_v7 = vadd.f32 %v1151_v50, %v1006_v36  ;;  %v1344_v2 = vmul.f32 %v2906_v48, %v3659_v10 }
 0x16a   :  { %v653_v12 = vadd.f32 %v637_v38, %v4604_v37  ;;  %v3818_v0 = vadd.f32 %v733_v34, %v4605_v3  ;;  %v1713_v23 = vsub.f32 %v1675_v14, %v2981_v28  ;;  %v1505_v6 = vmul.f32 %v2923_v58, %v3589_v44  ;;  %v4607_v14 = vld [vmem:[#allocation10_spill] sm:$0xff] }
 0x16b   :  { %v1777_v8 = vadd.f32 %v1745_v51, %v2973_v19  ;;  %v3822_v13 = vsub.f32 %v1097_v16, %v1119_v35  ;;  %v3824_v24 = vadd.f32 %v1183_v11, %v1167_v7  ;;  %v1376_v50 = vmul.f32 %v2902_v42, %v3661_v32  ;;  %v4606_v35 = vld [vmem:[#allocation40_spill] sm:$0xff]  ;;  %v4608_v32 = vld [vmem:[#allocation41_spill] sm:$0xff] }
 0x16c   :  { %v685_v10 = vsub.f32 %v653_v12, %v669_v26  ;;  %v803_v38 = vrot.slane %v3818_v0, 4  ;;  %2498 = vmatmul.mubr.msk.f32.gmra.mrb[22].mxu0 %vm257_vm2, %v1713_v23  ;;  %v1537_v11 = vmul.f32 %v2923_v58, %v3587_v22  ;;  %v1660_v51 = vmul.f32 %v4607_v14, %v4606_v35  ;;  %v4609_v26 = vld [vmem:[#allocation11_spill] sm:$0xff] }
 0x16d   :  { %2530 = vmatmul.mubr.msk.f32.gmra.mrb[22].mxu1 %vm257_vm2, %v1777_v8  ;;  %v1290_v19 = vadd.f32 %v1274_v21, %v3822_v13  ;;  %v1360_v28 = vadd.f32 %v1344_v2, %v3824_v24  ;;  %v1698_v16 = vmul.f32 %v4609_v26, %v4608_v32  ;;  %v1569_v7 = vmul.f32 %v2920_v57, %v3589_v44 }
 0x16e   :  { %v770_v37 = vrot.slane %v685_v10, 4  ;;  %v1730_v21 = vmul.f32 %v4609_v26, %v4606_v35  ;;  %v4612_v2 = vrot.slane %v4589_v4, 4  ;;  %v1762_v23 = vmul.f32 %v4607_v14, %v4608_v32 }
 0x16f   :  { %v3844_v12 = vsub.f32 %v1290_v19, %v1312_v41  ;;  %v3846_v3 = vadd.f32 %v1376_v50, %v1360_v28  ;;  %v4613_v8 = vrot.slane %v3739_v55, 4  ;;  %v1082_v41 = vmul.f32 %v2888_v46, %v942_v61 }
 0x170   :  { %v816_v22 = vsel %vm777_vm5, %v4612_v2, %v803_v38  ;;  %v1275_v50 = vmul.f32 %v2902_v42, %v3743_v30  ;;  %v1120_v55 = vmul.f32 %v2898_v52, %v1006_v36  ;;  %v670_v9 = vmul.f32 %v4614_v18, %v2838_v62 }
 0x171   :  { %4610 = vst [vmem:[#allocation21_spill] sm:$0xff] %v3844_v12  ;;  %4611 = vst [vmem:[#allocation27_spill] sm:$0xff] %v3846_v3  ;;  %v784_v44 = vsel %vm777_vm5, %v4613_v8, %v770_v37  ;;  %v1483_v19 = vadd.f32 %v1467_v25, %v3844_v12  ;;  %v1553_v4 = vadd.f32 %v1537_v11, %v3846_v3 }
 0x172   :  { %v889_v28 = vmul.f32 %v2877_v39, %v784_v44  ;;  %v959_v35 = vmul.f32 %v2884_v45, %v784_v44  ;;  %v927_v32 = vmul.f32 %v2884_v45, %v816_v22  ;;  %v991_v2 = vmul.f32 %v2877_v39, %v816_v22 }
 0x173   :  { %v1152_v8 = vmul.f32 %v2898_v52, %v942_v61  ;;  %v1521_v34 = vsub.f32 %v1483_v19, %v1505_v6  ;;  %v1585_v1 = vadd.f32 %v1569_v7, %v1553_v4  ;;  %v1313_v25 = vmul.f32 %v2906_v48, %v3745_v17  ;;  %v4615_v7 = vld [vmem:[#allocation42_spill] sm:$0xff] }
 0x174   :  { %v905_v27 = vadd.f32 %v889_v28, %v685_v10  ;;  %v975_v5 = vadd.f32 %v959_v35, %v3818_v0  ;;  %v1468_v11 = vmul.f32 %v2920_v57, %v3643_v63  ;;  %v1506_v44 = vmul.f32 %v2923_v58, %v3645_v56  ;;  %v4616_v0 = vld [vmem:[#allocation43_spill] sm:$0xff]  ;;  %v4617_v28 = vld [vmem:[#allocation33_spill] sm:$0xff] }
 0x175   :  { %v1676_v22 = vadd.f32 %v1660_v51, %v1521_v34  ;;  %v1746_v33 = vadd.f32 %v1730_v21, %v1585_v1  ;;  %v1661_v10 = vmul.f32 %v4607_v14, %v4615_v7  ;;  %v3884_v19 = vmul.f32 %v4609_v26, %v4616_v0 }
 0x176   :  { %v943_v61 = vsub.f32 %v905_v27, %v927_v32  ;;  %v1007_v6 = vadd.f32 %v991_v2, %v975_v5  ;;  %v1184_v4 = vmul.f32 %v2888_v46, %v1006_v36  ;;  %v3888_v35 = vsub.f32 %v4617_v28, %v670_v9 }
 0x177   :  { %v1714_v3 = vsub.f32 %v1676_v22, %v1698_v16  ;;  %v1778_v12 = vadd.f32 %v1762_v23, %v1746_v33  ;;  %v1345_v27 = vmul.f32 %v2906_v48, %v3743_v30  ;;  %v1377_v5 = vmul.f32 %v2902_v42, %v3745_v17 }
 0x178   :  { %v1098_v43 = vadd.f32 %v1082_v41, %v943_v61  ;;  %v1168_v18 = vadd.f32 %v1152_v8, %v1007_v6  ;;  %v1538_v1 = vmul.f32 %v2923_v58, %v3643_v63  ;;  %v771_v34 = vrot.slane %v3888_v35, 4 }
 0x179   :  { %2500 = vmatprep.mubr.msk.f32.mxu0 %vm257_vm2, %v1714_v3  ;;  %2532 = vmatprep.mubr.msk.f32.mxu1 %vm257_vm2, %v1778_v12  ;;  %v4618_v36 = vrot.slane %v3708_v29, 4  ;;  %v1570_v17 = vmul.f32 %v2920_v57, %v3645_v56  ;;  %v1731_v63 = vmul.f32 %v4609_v26, %v4615_v7  ;;  %v1763_v51 = vmul.f32 %v4607_v14, %v4616_v0  ;;  %v4619_v7 = vld [vmem:[#allocation32_spill] sm:$0xff] }
 0x17a   :  { %v3899_v9 = vsub.f32 %v1098_v43, %v1120_v55  ;;  %v3901_v33 = vadd.f32 %v1184_v4, %v1168_v18  ;;  %v783_v43 = vsel %vm777_vm5, %v770_v37, %v771_v34  ;;  %v1276_v21 = vmul.f32 %v2902_v42, %v3822_v13  ;;  %v4621_v4 = vld [vmem:[#allocation17_spill] sm:$0xff] }
 0x17b   :  { %v815_v30 = vsel %vm777_vm5, %v803_v38, %v4618_v36  ;;  %v890_v38 = vmul.f32 %v2877_v39, %v783_v43  ;;  %v960_v3 = vmul.f32 %v2884_v45, %v783_v43  ;;  %v1314_v23 = vmul.f32 %v2906_v48, %v3824_v24  ;;  %v4623_v43 = vld [vmem:[#allocation22_spill] sm:$0xff] }
 0x17c   :  { %v1291_v16 = vadd.f32 %v1275_v50, %v3899_v9  ;;  %v1361_v12 = vadd.f32 %v1345_v27, %v3901_v33  ;;  %v928_v56 = vmul.f32 %v2884_v45, %v815_v30  ;;  %v992_v41 = vmul.f32 %v2877_v39, %v815_v30 }
 0x17d   :  { %v906_v50 = vadd.f32 %v890_v38, %v3888_v35  ;;  %v976_v55 = vadd.f32 %v960_v3, %v3708_v29  ;;  %v1083_v2 = vmul.f32 %v2888_v46, %v943_v61  ;;  %v1121_v8 = vmul.f32 %v2898_v52, %v1007_v6 }
 0x17e   :  { %v3927_v32 = vsub.f32 %v1291_v16, %v1313_v25  ;;  %v3929_v37 = vadd.f32 %v1377_v5, %v1361_v12  ;;  %v1153_v22 = vmul.f32 %v2898_v52, %v943_v61  ;;  %v4620_v0 = vrot.slane %v4619_v7, 6 }
 0x17f   :  { %v4622_v28 = vrot.slane %v4621_v4, 6  ;;  %v944_v5 = vsub.f32 %v906_v50, %v928_v56  ;;  %v3944_v36 = vadd.f32 %v992_v41, %v976_v55  ;;  %v1185_v30 = vmul.f32 %v2888_v46, %v1007_v6  ;;  %v2571_v56 = vld [vmem:[#allocation4 + $0x58] sm:$0xff]  ;;  %v4624_v41 = vld [vmem:[#allocation34_spill] sm:$0xff] }
 0x180   :  { %v1484_v18 = vadd.f32 %v1468_v11, %v3927_v32  ;;  %v1554_v27 = vadd.f32 %v1538_v1, %v3929_v37  ;;  %v639_v16 = vmul.f32 %v4623_v43, %v2835_v59  ;;  %v1469_v11 = vmul.f32 %v2920_v57, %v3691_v31 }
 0x181   :  { %v568_v25 = vsel %vm531_vm3, %v4622_v28, %v4620_v0  ;;  %v1099_v7 = vadd.f32 %v1083_v2, %v944_v5  ;;  %v1169_v0 = vadd.f32 %v1153_v22, %v3944_v36  ;;  %v1346_v1 = vmul.f32 %v2906_v48, %v3822_v13 }
 0x182   :  { %v671_v61 = vmul.f32 %v568_v25, %v2838_v62  ;;  %v735_v12 = vmul.f32 %v568_v25, %v2835_v59  ;;  %v1522_v38 = vsub.f32 %v1484_v18, %v1506_v44  ;;  %v1586_v3 = vadd.f32 %v1570_v17, %v1554_v27 }
 0x183   :  { %v655_v6 = vadd.f32 %v2571_v56, %v639_v16  ;;  %v3959_v28 = vsub.f32 %v1099_v7, %v1121_v8  ;;  %v3961_v44 = vadd.f32 %v1185_v30, %v1169_v0  ;;  %v1507_v17 = vmul.f32 %v2923_v58, %v3693_v54  ;;  %v4625_v8 = vld [vmem:[#allocation44_spill] sm:$0xff]  ;;  %v4626_v30 = vld [vmem:[#allocation45_spill] sm:$0xff] }
 0x184   :  { %v3957_v50 = vadd.f32 %v735_v12, %v4624_v41  ;;  %v1677_v55 = vadd.f32 %v1661_v10, %v1522_v38  ;;  %v1747_v4 = vadd.f32 %v1731_v63, %v1586_v3  ;;  %v1378_v2 = vmul.f32 %v2902_v42, %v3824_v24 }
 0x185   :  { %v3967_v22 = vsub.f32 %v655_v6, %v671_v61  ;;  %v1292_v10 = vadd.f32 %v1276_v21, %v3959_v28  ;;  %v1362_v63 = vadd.f32 %v1346_v1, %v3961_v44  ;;  %v1662_v27 = vmul.f32 %v4607_v14, %v4625_v8 }
 0x186   :  { %v805_v13 = vrot.slane %v3957_v50, 4  ;;  %v1715_v25 = vsub.f32 %v1677_v55, %v3884_v19  ;;  %v1779_v18 = vadd.f32 %v1763_v51, %v1747_v4  ;;  %v1700_v43 = vmul.f32 %v4609_v26, %v4626_v30 }
 0x187   :  { %v1539_v24 = vmul.f32 %v2923_v58, %v3691_v31  ;;  %v772_v16 = vrot.slane %v3967_v22, 4  ;;  %v3982_v19 = vsub.f32 %v1292_v10, %v1314_v23  ;;  %v3984_v51 = vadd.f32 %v1378_v2, %v1362_v63 }
 0x188   :  { %2501 = vmatmul.mubr.msk.f32.gmra.mrb[24].mxu0 %vm257_vm2, %v1715_v25  ;;  %2533 = vmatmul.mubr.msk.f32.gmra.mrb[24].mxu1 %vm257_vm2, %v1779_v18  ;;  %v4627_v21 = vrot.slane %v3708_v29, 4  ;;  %v806_v12 = vrot.slane %v3764_v49, 4  ;;  %v1571_v31 = vmul.f32 %v2920_v57, %v3693_v54  ;;  %v1732_v38 = vmul.f32 %v4609_v26, %v4625_v8  ;;  %v4019_v8 = vld [vmem:[#allocation5 + $0x68] sm:$0xff] }
 0x189   :  { %v1764_v3 = vmul.f32 %v4607_v14, %v4626_v30  ;;  %v782_v23 = vsel %vm777_vm5, %v771_v34, %v772_v16  ;;  %v1485_v29 = vadd.f32 %v1469_v11, %v3982_v19  ;;  %v1555_v7 = vadd.f32 %v1539_v24, %v3984_v51 }
 0x18a   :  { %v814_v61 = vsel %vm777_vm5, %v4627_v21, %v805_v13  ;;  %v891_v0 = vmul.f32 %v2877_v39, %v782_v23  ;;  %v961_v1 = vmul.f32 %v2884_v45, %v782_v23  ;;  %v1084_v56 = vmul.f32 %v2888_v46, %v944_v5  ;;  %v4629_v23 = vld [vmem:[#allocation9_spill] sm:$0xff] }
 0x18b   :  { %v929_v54 = vmul.f32 %v2884_v45, %v814_v61  ;;  %v993_v6 = vmul.f32 %v2877_v39, %v814_v61  ;;  %v1154_v41 = vmul.f32 %v2898_v52, %v944_v5  ;;  %v1523_v35 = vsub.f32 %v1485_v29, %v1507_v17 }
 0x18c   :  { %v1587_v55 = vadd.f32 %v1571_v31, %v1555_v7  ;;  %v907_v34 = vadd.f32 %v891_v0, %v3967_v22  ;;  %v977_v11 = vadd.f32 %v961_v1, %v3957_v50  ;;  %v1122_v4 = vmul.f32 %v2898_v52, %v3944_v36  ;;  %v4628_v31 = vld [vmem:[#allocation46_spill] sm:$0xff] }
 0x18d   :  { %v1277_v2 = vmul.f32 %v2902_v42, %v3899_v9  ;;  %v1315_v25 = vmul.f32 %v2906_v48, %v3901_v33  ;;  %v672_v18 = vmul.f32 %v3487_v60, %v2838_v62  ;;  %v1678_v10 = vadd.f32 %v1662_v27, %v1523_v35 }
 0x18e   :  { %v1748_v5 = vadd.f32 %v1732_v38, %v1587_v55  ;;  %v945_v17 = vsub.f32 %v907_v34, %v929_v54  ;;  %v1009_v63 = vadd.f32 %v993_v6, %v977_v11  ;;  %v1470_v50 = vmul.f32 %v2920_v57, %v3774_v20 }
 0x18f   :  { %v1508_v22 = vmul.f32 %v2923_v58, %v3776_v15  ;;  %v1186_v30 = vmul.f32 %v2888_v46, %v3944_v36  ;;  %v4028_v24 = vsub.f32 %v3712_v40, %v672_v18  ;;  %v1716_v21 = vsub.f32 %v1678_v10, %v1700_v43 }
 0x190   :  { %v1780_v60 = vadd.f32 %v1764_v3, %v1748_v5  ;;  %v1100_v27 = vadd.f32 %v1084_v56, %v945_v17  ;;  %v1170_v61 = vadd.f32 %v1154_v41, %v1009_v63  ;;  %v1663_v38 = vmul.f32 %v4607_v14, %v4628_v31 }
 0x191   :  { %v1701_v29 = vmul.f32 %v4609_v26, %v4629_v23  ;;  %v1347_v7 = vmul.f32 %v2906_v48, %v3899_v9  ;;  %v773_v0 = vrot.slane %v4028_v24, 4  ;;  %v561_v36 = vrot.slane %v4019_v8, 6  ;;  %2503 = vmatprep.mubr.msk.f32.mxu0 %vm257_vm2, %v1716_v21 }
 0x192   :  { %2535 = vmatprep.mubr.msk.f32.mxu1 %vm257_vm2, %v1780_v60  ;;  %v4040_v40 = vsub.f32 %v1100_v27, %v1122_v4  ;;  %v4042_v43 = vadd.f32 %v1186_v30, %v1170_v61  ;;  %v813_v3 = vsel %vm777_vm5, %v805_v13, %v806_v12  ;;  %v1379_v9 = vmul.f32 %v2902_v42, %v3901_v33 }
 0x193   :  { %v1540_v1 = vmul.f32 %v2923_v58, %v3774_v20  ;;  %v1572_v54 = vmul.f32 %v2920_v57, %v3776_v15  ;;  %v781_v56 = vsel %vm777_vm5, %v772_v16, %v773_v0  ;;  %v1733_v33 = vmul.f32 %v4609_v26, %v4628_v31  ;;  %v4630_v31 = vld [vmem:[#allocation26_spill] sm:$0xff] }
 0x194   :  { %v1293_v6 = vadd.f32 %v1277_v2, %v4040_v40  ;;  %v1363_v41 = vadd.f32 %v1347_v7, %v4042_v43  ;;  %v892_v13 = vmul.f32 %v2877_v39, %v781_v56  ;;  %v962_v35 = vmul.f32 %v2884_v45, %v781_v56 }
 0x195   :  { %v1765_v20 = vmul.f32 %v4607_v14, %v4629_v23  ;;  %v930_v15 = vmul.f32 %v2884_v45, %v813_v3  ;;  %v994_v55 = vmul.f32 %v2877_v39, %v813_v3  ;;  %v1085_v2 = vmul.f32 %v2888_v46, %v945_v17 }
 0x196   :  { %v4068_v34 = vsub.f32 %v1293_v6, %v1315_v25  ;;  %v4070_v16 = vadd.f32 %v1379_v9, %v1363_v41  ;;  %v908_v11 = vadd.f32 %v892_v13, %v4028_v24  ;;  %v978_v4 = vadd.f32 %v962_v35, %v3764_v49 }
 0x197   :  { %v1123_v18 = vmul.f32 %v2898_v52, %v1009_v63  ;;  %v1278_v10 = vmul.f32 %v2902_v42, %v3959_v28  ;;  %v1155_v5 = vmul.f32 %v2898_v52, %v945_v17  ;;  %v1187_v27 = vmul.f32 %v2888_v46, %v1009_v63  ;;  %v4633_v17 = vld [vmem:[#allocation29_spill] sm:$0xff] }
 0x198   :  { %v1486_v30 = vadd.f32 %v1470_v50, %v4068_v34  ;;  %v1556_v25 = vadd.f32 %v1540_v1, %v4070_v16  ;;  %v946_v21 = vsub.f32 %v908_v11, %v930_v15  ;;  %v4081_v60 = vadd.f32 %v994_v55, %v978_v4  ;;  %v2572_v4 = vld [vmem:[#allocation4 + $0x68] sm:$0xff] }
 0x199   :  { %v1348_v61 = vmul.f32 %v2906_v48, %v3959_v28  ;;  %v4631_v23 = vrot.slane %v4630_v31, 6  ;;  %v4632_v7 = vrot.slane %v4591_v53, 6  ;;  %v4634_v50 = vrot.slane %v4633_v17, 6 }
 0x19a   :  { %v1524_v1 = vsub.f32 %v1486_v30, %v1508_v22  ;;  %v1588_v56 = vadd.f32 %v1572_v54, %v1556_v25  ;;  %v1101_v63 = vadd.f32 %v1085_v2, %v946_v21  ;;  %v1171_v6 = vadd.f32 %v1155_v5, %v4081_v60 }
 0x19b   :  { %v534_v3 = vsel %vm531_vm3, %v4632_v7, %v4631_v23  ;;  %v566_v9 = vsel %vm531_vm3, %v4634_v50, %v561_v36  ;;  %v1316_v22 = vmul.f32 %v2906_v48, %v3961_v44  ;;  %v1380_v54 = vmul.f32 %v2902_v42, %v3961_v44 }
 0x19c   :  { %v641_v28 = vmul.f32 %v534_v3, %v2835_v59  ;;  %v673_v41 = vmul.f32 %v566_v9, %v2838_v62  ;;  %v705_v53 = vmul.f32 %v534_v3, %v2838_v62  ;;  %v737_v13 = vmul.f32 %v566_v9, %v2835_v59 }
 0x19d   :  { %v1679_v35 = vadd.f32 %v1663_v38, %v1524_v1  ;;  %v1749_v15 = vadd.f32 %v1733_v33, %v1588_v56  ;;  %v4103_v55 = vsub.f32 %v1101_v63, %v1123_v18  ;;  %v4105_v11 = vadd.f32 %v1187_v27, %v1171_v6  ;;  %v4635_v33 = vld [vmem:[#allocation21_spill] sm:$0xff]  ;;  %v4638_v6 = vld [vmem:[#allocation16_spill] sm:$0xff] }
 0x19e   :  { %v657_v2 = vadd.f32 %v2572_v4, %v641_v28  ;;  %v721_v5 = vadd.f32 %v705_v53, %v4019_v8  ;;  %v1471_v18 = vmul.f32 %v2920_v57, %v4635_v33  ;;  %v1702_v28 = vmul.f32 %v4609_v26, %v4638_v6 }
 0x19f   :  { %v1717_v30 = vsub.f32 %v1679_v35, %v1701_v29  ;;  %v1781_v25 = vadd.f32 %v1765_v20, %v1749_v15  ;;  %v1294_v31 = vadd.f32 %v1278_v10, %v4103_v55  ;;  %v1364_v38 = vadd.f32 %v1348_v61, %v4105_v11  ;;  %v4636_v20 = vld [vmem:[#allocation27_spill] sm:$0xff]  ;;  %v4637_v61 = vld [vmem:[#allocation14_spill] sm:$0xff] }
 0x1a0   :  { %v4116_v27 = vsub.f32 %v657_v2, %v673_v41  ;;  %v4118_v23 = vadd.f32 %v737_v13, %v721_v5  ;;  %v1541_v29 = vmul.f32 %v2923_v58, %v4635_v33  ;;  %v1509_v10 = vmul.f32 %v2923_v58, %v4636_v20 }
 0x1a1   :  { %2504 = vmatmul.mubr.msk.f32.gmra.mrb[26].mxu0 %vm257_vm2, %v1717_v30  ;;  %2536 = vmatmul.mubr.msk.f32.gmra.mrb[26].mxu1 %vm257_vm2, %v1781_v25  ;;  %v1332_v44 = vsub.f32 %v1294_v31, %v1316_v22  ;;  %v1396_v7 = vadd.f32 %v1380_v54, %v1364_v38  ;;  %v1664_v3 = vmul.f32 %v4607_v14, %v4637_v61  ;;  %v4639_v38 = vld [vmem:[#allocation35_spill] sm:$0xff] }
 0x1a2   :  { %v774_v17 = vrot.slane %v4116_v27, 4  ;;  %v807_v50 = vrot.slane %v4118_v23, 4  ;;  %v1573_v56 = vmul.f32 %v2920_v57, %v4636_v20  ;;  %v1734_v63 = vmul.f32 %v4609_v26, %v4637_v61 }
 0x1a3   :  { %v1487_v9 = vadd.f32 %v1471_v18, %v1332_v44  ;;  %v1557_v1 = vadd.f32 %v1541_v29, %v1396_v7  ;;  %v1766_v41 = vmul.f32 %v4607_v14, %v4638_v6  ;;  %v1279_v54 = vmul.f32 %v2902_v42, %v4040_v40  ;;  %v4641_v44 = vld [vmem:[#allocation36_spill] sm:$0xff] }
 0x1a4   :  { %v780_v53 = vsel %vm777_vm5, %v773_v0, %v774_v17  ;;  %v812_v13 = vsel %vm777_vm5, %v806_v12, %v807_v50  ;;  %v1086_v4 = vmul.f32 %v2888_v46, %v946_v21  ;;  %v1124_v24 = vmul.f32 %v2898_v52, %v4081_v60 }
 0x1a5   :  { %v1525_v35 = vsub.f32 %v1487_v9, %v1509_v10  ;;  %v1589_v15 = vadd.f32 %v1573_v56, %v1557_v1  ;;  %v893_v22 = vmul.f32 %v2877_v39, %v780_v53  ;;  %v963_v2 = vmul.f32 %v2884_v45, %v780_v53 }
 0x1a6   :  { %v1156_v0 = vmul.f32 %v2898_v52, %v946_v21  ;;  %v931_v30 = vmul.f32 %v2884_v45, %v812_v13  ;;  %v995_v31 = vmul.f32 %v2877_v39, %v812_v13  ;;  %v4640_v33 = vrot.slane %v4639_v38, 6  ;;  %v4644_v13 = vld [vmem:[#allocation20_spill] sm:$0xff] }
 0x1a7   :  { %v1680_v49 = vadd.f32 %v1664_v3, %v1525_v35  ;;  %v1750_v5 = vadd.f32 %v1734_v63, %v1589_v15  ;;  %v909_v12 = vadd.f32 %v893_v22, %v4116_v27  ;;  %v979_v25 = vadd.f32 %v963_v2, %v4118_v23  ;;  %v2573_v23 = vld [vmem:[#allocation4 + $0x70] sm:$0xff] }
 0x1a8   :  { %v565_v18 = vsel %vm531_vm3, %v561_v36, %v4640_v33  ;;  %v642_v21 = vmul.f32 %v4641_v44, %v2835_v59  ;;  %v1317_v27 = vmul.f32 %v2906_v48, %v4042_v43  ;;  %v1472_v36 = vmul.f32 %v2920_v57, %v3927_v32 }
 0x1a9   :  { %v1718_v7 = vsub.f32 %v1680_v49, %v1702_v28  ;;  %v1782_v29 = vadd.f32 %v1766_v41, %v1750_v5  ;;  %v947_v20 = vsub.f32 %v909_v12, %v931_v30  ;;  %v1011_v10 = vadd.f32 %v995_v31, %v979_v25  ;;  %v4642_v28 = vld [vmem:[#allocation37_spill] sm:$0xff] }
 0x1aa   :  { %v658_v61 = vadd.f32 %v2573_v23, %v642_v21  ;;  %v674_v3 = vmul.f32 %v565_v18, %v2838_v62  ;;  %v738_v9 = vmul.f32 %v565_v18, %v2835_v59  ;;  %v1510_v1 = vmul.f32 %v2923_v58, %v3929_v37  ;;  %v4643_v59 = vld [vmem:[#allocation12_spill] sm:$0xff] }
 0x1ab   :  { %2506 = vmatprep.mubr.msk.f32.mxu0 %vm257_vm2, %v1718_v7  ;;  %2538 = vmatprep.mubr.msk.f32.mxu1 %vm257_vm2, %v1782_v29  ;;  %v1102_v8 = vadd.f32 %v1086_v4, %v947_v20  ;;  %v1172_v56 = vadd.f32 %v1156_v0, %v1011_v10  ;;  %v1188_v63 = vmul.f32 %v2888_v46, %v4081_v60 }
 0x1ac   :  { %v690_v6 = vsub.f32 %v658_v61, %v674_v3  ;;  %v754_v62 = vadd.f32 %v738_v9, %v4642_v28  ;;  %v1665_v53 = vmul.f32 %v4607_v14, %v4643_v59  ;;  %v1703_v35 = vmul.f32 %v4609_v26, %v4644_v13  ;;  %v4647_v3 = vld [vmem:[#allocation39_spill] sm:$0xff] }
 0x1ad   :  { %v4179_v41 = vsub.f32 %v1102_v8, %v1124_v24  ;;  %v1349_v15 = vmul.f32 %v2906_v48, %v4040_v40  ;;  %v4187_v22 = vadd.f32 %v1188_v63, %v1172_v56  ;;  %v1381_v4 = vmul.f32 %v2902_v42, %v4042_v43 }
 0x1ae   :  { %v775_v60 = vrot.slane %v690_v6, 4  ;;  %v808_v2 = vrot.slane %v754_v62, 4  ;;  %v1542_v24 = vmul.f32 %v2923_v58, %v3927_v32  ;;  %v1574_v49 = vmul.f32 %v2920_v57, %v3929_v37 }
 0x1af   :  { %v1295_v0 = vadd.f32 %v1279_v54, %v4179_v41  ;;  %v1735_v5 = vmul.f32 %v4609_v26, %v4643_v59  ;;  %v1365_v40 = vadd.f32 %v1349_v15, %v4187_v22  ;;  %v1767_v12 = vmul.f32 %v4607_v14, %v4644_v13 }
 0x1b0   :  { %v779_v43 = vsel %vm777_vm5, %v774_v17, %v775_v60  ;;  %v811_v54 = vsel %vm777_vm5, %v807_v50, %v808_v2  ;;  %v1280_v37 = vmul.f32 %v2902_v42, %v4103_v55  ;;  %v1087_v33 = vmul.f32 %v2888_v46, %v947_v20 }
 0x1b1   :  { %v1333_v30 = vsub.f32 %v1295_v0, %v1317_v27  ;;  %v894_v32 = vmul.f32 %v2877_v39, %v779_v43  ;;  %v964_v25 = vmul.f32 %v2884_v45, %v779_v43  ;;  %v1397_v31 = vadd.f32 %v1381_v4, %v1365_v40  ;;  %v4645_v27 = vld [vmem:[#allocation38_spill] sm:$0xff] }
 0x1b2   :  { %v932_v38 = vmul.f32 %v2884_v45, %v811_v54  ;;  %v1318_v18 = vmul.f32 %v2906_v48, %v4105_v11  ;;  %v996_v50 = vmul.f32 %v2877_v39, %v811_v54  ;;  %v1157_v29 = vmul.f32 %v2898_v52, %v947_v20 }
 0x1b3   :  { %v1488_v17 = vadd.f32 %v1472_v36, %v1333_v30  ;;  %v910_v44 = vadd.f32 %v894_v32, %v690_v6  ;;  %v980_v21 = vadd.f32 %v964_v25, %v754_v62  ;;  %v1558_v7 = vadd.f32 %v1542_v24, %v1397_v31 }
 0x1b4   :  { %v4646_v23 = vrot.slane %v4645_v27, 4  ;;  %v4648_v9 = vrot.slane %v4647_v3, 4  ;;  %v1125_v62 = vmul.f32 %v2898_v52, %v1011_v10  ;;  %v1189_v20 = vmul.f32 %v2888_v46, %v1011_v10 }
 0x1b5   :  { %v1526_v56 = vsub.f32 %v1488_v17, %v1510_v1  ;;  %v948_v63 = vsub.f32 %v910_v44, %v932_v38  ;;  %v1012_v36 = vadd.f32 %v996_v50, %v980_v21  ;;  %v1590_v28 = vadd.f32 %v1574_v49, %v1558_v7  ;;  %v4649_v44 = vld [vmem:[#allocation23_spill] sm:$0xff] }
 0x1b6   :  { %v778_v61 = vsel %vm777_vm5, %v775_v60, %v4646_v23  ;;  %v810_v8 = vsel %vm777_vm5, %v808_v2, %v4648_v9  ;;  %v1473_v47 = vmul.f32 %v2920_v57, %v3982_v19  ;;  %v1350_v1 = vmul.f32 %v2906_v48, %v4103_v55 }
 0x1b7   :  { %v895_v6 = vmul.f32 %v2877_v39, %v778_v61  ;;  %v933_v59 = vmul.f32 %v2884_v45, %v810_v8  ;;  %v1681_v13 = vadd.f32 %v1665_v53, %v1526_v56  ;;  %v1103_v15 = vadd.f32 %v1087_v33, %v948_v63 }
 0x1b8   :  { %v1173_v4 = vadd.f32 %v1157_v29, %v1012_v36  ;;  %v1751_v0 = vadd.f32 %v1735_v5, %v1590_v28  ;;  %v1088_v2 = vmul.f32 %v2888_v46, %v948_v63  ;;  %v1511_v53 = vmul.f32 %v2923_v58, %v3984_v51  ;;  %v4650_v29 = vld [vmem:[#allocation30_spill] sm:$0xff] }
 0x1b9   :  { %v911_v60 = vadd.f32 %v895_v6, %v4645_v27  ;;  %v1719_v24 = vsub.f32 %v1681_v13, %v1703_v35  ;;  %v1141_v49 = vsub.f32 %v1103_v15, %v1125_v62  ;;  %v1382_v54 = vmul.f32 %v2902_v42, %v4105_v11  ;;  %v4651_v6 = vld [vmem:[#allocation31_spill] sm:$0xff] }
 0x1ba   :  { %v1205_v40 = vadd.f32 %v1189_v20, %v1173_v4  ;;  %v1783_v43 = vadd.f32 %v1767_v12, %v1751_v0  ;;  %v1126_v5 = vmul.f32 %v2898_v52, %v1012_v36  ;;  %v965_v25 = vmul.f32 %v2884_v45, %v778_v61 }
 0x1bb   :  { %v949_v10 = vsub.f32 %v911_v60, %v933_v59  ;;  %2507 = vmatmul.mubr.msk.f32.gmra.mrb[28].mxu0 %vm257_vm2, %v1719_v24  ;;  %v1296_v30 = vadd.f32 %v1280_v37, %v1141_v49  ;;  %v1543_v35 = vmul.f32 %v2923_v58, %v3982_v19  ;;  %v1281_v12 = vmul.f32 %v2902_v42, %v4179_v41 }
 0x1bc   :  { %v1366_v32 = vadd.f32 %v1350_v1, %v1205_v40  ;;  %2539 = vmatmul.mubr.msk.f32.gmra.mrb[28].mxu1 %vm257_vm2, %v1783_v43  ;;  %v997_v31 = vmul.f32 %v2877_v39, %v810_v8  ;;  %v1158_v11 = vmul.f32 %v2898_v52, %v948_v63  ;;  %v981_v37 = vadd.f32 %v965_v25, %v4647_v3 }
 0x1bd   :  { %v1104_v55 = vadd.f32 %v1088_v2, %v949_v10  ;;  %v1334_v38 = vsub.f32 %v1296_v30, %v1318_v18  ;;  %v1666_v45 = vmul.f32 %v4607_v14, %v4649_v44  ;;  %v1575_v21 = vmul.f32 %v2920_v57, %v3984_v51 }
 0x1be   :  { %v1398_v33 = vadd.f32 %v1382_v54, %v1366_v32  ;;  %v1736_v19 = vmul.f32 %v4609_v26, %v4649_v44  ;;  %v1319_v50 = vmul.f32 %v2906_v48, %v4187_v22  ;;  %v1013_v18 = vadd.f32 %v997_v31, %v981_v37  ;;  %v2577_v44 = vld [vmem:[%s4432_s0 + $0x10] sm:$0xff] }
 0x1bf   :  { %v1142_v17 = vsub.f32 %v1104_v55, %v1126_v5  ;;  %v1489_v39 = vadd.f32 %v1473_v47, %v1334_v38  ;;  %v1704_v27 = vmul.f32 %v4609_v26, %v4650_v29  ;;  %v1474_v23 = vmul.f32 %v2920_v57, %v4068_v34  ;;  %v4652_v47 = vld [vmem:[#allocation25_spill] sm:$0xff] }
 0x1c0   :  { %v1559_v7 = vadd.f32 %v1543_v35, %v1398_v33  ;;  %v1190_v61 = vmul.f32 %v2888_v46, %v1012_v36  ;;  %v1174_v8 = vadd.f32 %v1158_v11, %v1013_v18  ;;  %v1768_v56 = vmul.f32 %v4607_v14, %v4650_v29  ;;  %v2576_v33 = vld [vmem:[%s4432_s0 + $0x18] sm:$0xff] }
 0x1c1   :  { %v1297_v52 = vadd.f32 %v1281_v12, %v1142_v17  ;;  %v1527_v3 = vsub.f32 %v1489_v39, %v1511_v53  ;;  %v1512_v63 = vmul.f32 %v2923_v58, %v4070_v16  ;;  %v1667_v28 = vmul.f32 %v4607_v14, %v4651_v6 }
 0x1c2   :  { %v1591_v51 = vadd.f32 %v1575_v21, %v1559_v7  ;;  %v1351_v62 = vmul.f32 %v2906_v48, %v4179_v41  ;;  %v1206_v46 = vadd.f32 %v1190_v61, %v1174_v8  ;;  %v1383_v36 = vmul.f32 %v2902_v42, %v4187_v22 }
 0x1c3   :  { %v1335_v9 = vsub.f32 %v1297_v52, %v1319_v50  ;;  %v1682_v20 = vadd.f32 %v1666_v45, %v1527_v3  ;;  %v1705_v1 = vmul.f32 %v4609_v26, %v4652_v47  ;;  %v1544_v41 = vmul.f32 %v2923_v58, %v4068_v34 }
 0x1c4   :  { %v1752_v59 = vadd.f32 %v1736_v19, %v1591_v51  ;;  %v1367_v0 = vadd.f32 %v1351_v62, %v1206_v46  ;;  %v1576_v42 = vmul.f32 %v2920_v57, %v4070_v16  ;;  %v1737_v22 = vmul.f32 %v4609_v26, %v4651_v6  ;;  %v4290_v57 = vld [vmem:[%s4440_s8] ss:$0 sm:$0xff]  ;;  %v2574_v26 = vld [vmem:[%s4432_s0 + $0x8] sm:$0xff] }
 0x1c5   :  { %v1490_v13 = vadd.f32 %v1474_v23, %v1335_v9  ;;  %v1720_v15 = vsub.f32 %v1682_v20, %v1704_v27  ;;  %v1769_v43 = vmul.f32 %v4607_v14, %v4652_v47  ;;  %v2207_v14 = vmul.f32 %v2574_v26, %v4290_v57  ;;  %v2575_v16 = vld [vmem:[%s4432_s0] sm:$0xff] }
 0x1c6   :  { %v1784_v4 = vadd.f32 %v1768_v56, %v1752_v59  ;;  %v1399_v48 = vadd.f32 %v1383_v36, %v1367_v0  ;;  %v2206_v54 = vmul.f32 %v2575_v16, %v4290_v57  ;;  %v2209_v17 = vmul.f32 %v2576_v33, %v4290_v57 }
 0x1c7   :  { %v1528_v60 = vsub.f32 %v1490_v13, %v1512_v63  ;;  %2509 = vmatprep.mubr.msk.f32.mxu0 %vm257_vm2, %v1720_v15  ;;  %v2208_v45 = vmul.f32 %v2577_v44, %v4290_v57 }
 0x1c8   :  { %2541 = vmatprep.mubr.msk.f32.mxu1 %vm257_vm2, %v1784_v4  ;;  %v1560_v49 = vadd.f32 %v1544_v41, %v1399_v48 }
 0x1c9   :  { %v1683_v2 = vadd.f32 %v1667_v28, %v1528_v60 }
 0x1ca   :  { %v1592_v40 = vadd.f32 %v1576_v42, %v1560_v49 }
 0x1cb   :  { %v1721_v24 = vsub.f32 %v1683_v2, %v1705_v1 }
 0x1cc   :  { %v1753_v10 = vadd.f32 %v1737_v22, %v1592_v40 }
 0x1cd   :  { %1787 = vst.msk [vmem:[#allocation2 - $0x6] sm:$0xc0] %vm1786_vm7, %v1721_v24  ;;  %2510 = vmatmul.mubr.msk.f32.gmra.mrb[30].mxu0 %vm257_vm2, %v1721_v24 }
 0x1ce   :  { %v1785_v53 = vadd.f32 %v1769_v43, %v1753_v10 }
 0x1d0   :  { %1788 = vst.msk [vmem:[#allocation3 - $0x6] sm:$0xc0] %vm1786_vm7, %v1785_v53  ;;  %2542 = vmatmul.mubr.msk.f32.gmra.mrb[30].mxu1 %vm257_vm2, %v1785_v53 }
 0x1d4   :  { %v2257_v58 = vld [vmem:[#allocation2] sm:$0x3] }
 0x1d5   :  { %2258 = vst.msk [vmem:[#allocation6] sm:$0x3] %vm40_vm1, %v2257_v58 }
 0x1d7   :  { %v2259_v34 = vld [vmem:[#allocation3] sm:$0x3] }
 0x1d8   :  { %2261 = vst.msk [vmem:[#allocation6 + $0x2] sm:$0x3] %vm40_vm1, %v2259_v34 }
 0x204   :  { %v2490_v5 = vpop.f32.mrb[16].mxu0 }
 0x205   :  { %v2522_v30 = vpop.f32.mrb[16].mxu1  ;;  %v1907_v55 = vpop.f32.mrb[17].mxu0 }
 0x206   :  { %v2184_v32 = vsub.f32 %v2490_v5, %v2522_v30  ;;  %v2104_v25 = vpop.f32.mrb[17].mxu1 }
 0x207   :  { %v2183_v35 = vsub.f32 %v1907_v55, %v2104_v25 }
 0x208   :  { %v2223_v12 = vadd.f32 %v2207_v14, %v2184_v32 }
 0x209   :  { %v2222_v31 = vadd.f32 %v2206_v54, %v2183_v35 }
 0x20a   :  { %2239 = vst.msk [vmem:[%s4441_s9 + $0x8] sm:$0xff] %vm63_vm0, %v2223_v12 }
 0x20b   :  { %2238 = vst.msk [vmem:[%s4441_s9] sm:$0xff] %vm63_vm0, %v2222_v31 }
 0x20c   :  { %v2493_v11 = vpop.f32.mrb[18].mxu0 }
 0x20d   :  { %v1917_v38 = vpop.f32.mrb[19].mxu0 }
 0x214   :  { %v2525_v37 = vpop.f32.mrb[18].mxu1 }
 0x215   :  { %v2186_v21 = vsub.f32 %v2493_v11, %v2525_v37  ;;  %v2114_v19 = vpop.f32.mrb[19].mxu1 }
 0x216   :  { %v2185_v50 = vsub.f32 %v1917_v38, %v2114_v19 }
 0x217   :  { %v2225_v39 = vadd.f32 %v2209_v17, %v2186_v21 }
 0x218   :  { %v2224_v7 = vadd.f32 %v2208_v45, %v2185_v50 }
 0x219   :  { %2241 = vst.msk [vmem:[%s4441_s9 + $0x18] sm:$0xff] %vm63_vm0, %v2225_v39 }
 0x21a   :  { %2240 = vst.msk [vmem:[%s4441_s9 + $0x10] sm:$0xff] %vm63_vm0, %v2224_v7 }
 0x21b   :  { %2601 = shalt.err (!%p2598_p4)
}
 0x21c   :  { %s2602_s5 = scalar_lea.hbm %s4442_s10, 64 }
 0x21d   :  { %p2603_p5 = scmp.ne.s32.totalorder %s4442_s10, %s2602_s5  ;;  %p2606_p6 = scmp.lt.u32.totalorder %s2602_s5, %s4442_s10 }
 0x21f   :  { %p2608_p7 = pnand %p2606_p6, %p2603_p5 }
 0x221   :  { %2611 = shalt.err (!%p2608_p7)
}
 0x222   :  { %s2615_s2 = smov 32   ;;  %s2616_s3 = smov 2   ;;  %v2578_v52 = vld [vmem:[%s4432_s0 + $0x28] sm:$0xff]  ;;  %v2579_v23 = vld [vmem:[%s4432_s0 + $0x20] sm:$0xff]  ;;  %v2580_v6 = vld [vmem:[%s4432_s0 + $0x38] sm:$0xff] }
 0x223   :  { %2275 = dma.vmem_to_hbm [thread:$0]  %s2270_s4, 64, %s4442_s10, [#allocation7], %s2615_s2, %s2615_s2, %s2616_s3   ;;  %v2211_v18 = vmul.f32 %v2578_v52, %v4290_v57  ;;  %v2210_v61 = vmul.f32 %v2579_v23, %v4290_v57  ;;  %v2213_v28 = vmul.f32 %v2580_v6, %v4290_v57 }
 0x224   :  { %v2581_v59 = vld [vmem:[%s4432_s0 + $0x30] sm:$0xff]  ;;  %v2582_v47 = vld [vmem:[%s4432_s0 + $0x48] sm:$0xff]  ;;  %v2583_v41 = vld [vmem:[%s4432_s0 + $0x40] sm:$0xff] }
 0x225   :  { %v2212_v13 = vmul.f32 %v2581_v59, %v4290_v57  ;;  %v2215_v1 = vmul.f32 %v2582_v47, %v4290_v57  ;;  %v2214_v24 = vmul.f32 %v2583_v41, %v4290_v57  ;;  %v2584_v53 = vld [vmem:[%s4432_s0 + $0x58] sm:$0xff]  ;;  %v2585_v14 = vld [vmem:[%s4432_s0 + $0x50] sm:$0xff]  ;;  %v2586_v12 = vld [vmem:[%s4432_s0 + $0x68] sm:$0xff] }
 0x226   :  { %v2217_v58 = vmul.f32 %v2584_v53, %v4290_v57  ;;  %v2216_v16 = vmul.f32 %v2585_v14, %v4290_v57  ;;  %v2219_v31 = vmul.f32 %v2586_v12, %v4290_v57  ;;  %v2587_v33 = vld [vmem:[%s4432_s0 + $0x60] sm:$0xff]  ;;  %v2588_v7 = vld [vmem:[%s4432_s0 + $0x78] sm:$0xff] }
 0x227   :  { %v2218_v17 = vmul.f32 %v2587_v33, %v4290_v57  ;;  %v2221_v52 = vmul.f32 %v2588_v7, %v4290_v57 }
 0x22b   :  { %v2496_v29 = vpop.f32.mrb[20].mxu0 }
 0x22c   :  { %v2528_v27 = vpop.f32.mrb[20].mxu1  ;;  %v1927_v51 = vpop.f32.mrb[21].mxu0 }
 0x22d   :  { %v2188_v3 = vsub.f32 %v2496_v29, %v2528_v27  ;;  %v2124_v9 = vpop.f32.mrb[21].mxu1  ;;  %v2589_v29 = vld [vmem:[%s4432_s0 + $0x70] sm:$0xff] }
 0x22e   :  { %v2187_v8 = vsub.f32 %v1927_v51, %v2124_v9  ;;  %v2220_v27 = vmul.f32 %v2589_v29, %v4290_v57 }
 0x22f   :  { %v2227_v56 = vadd.f32 %v2211_v18, %v2188_v3 }
 0x230   :  { %v2226_v63 = vadd.f32 %v2210_v61, %v2187_v8 }
 0x231   :  { %2243 = vst.msk [vmem:[%s4441_s9 + $0x28] sm:$0xff] %vm63_vm0, %v2227_v56 }
 0x232   :  { %2242 = vst.msk [vmem:[%s4441_s9 + $0x20] sm:$0xff] %vm63_vm0, %v2226_v63 }
 0x23f   :  { %v2499_v62 = vpop.f32.mrb[22].mxu0 }
 0x240   :  { %v2531_v20 = vpop.f32.mrb[22].mxu1  ;;  %v1937_v36 = vpop.f32.mrb[23].mxu0 }
 0x241   :  { %v2190_v46 = vsub.f32 %v2499_v62, %v2531_v20  ;;  %v2134_v15 = vpop.f32.mrb[23].mxu1 }
 0x242   :  { %v2189_v4 = vsub.f32 %v1937_v36, %v2134_v15 }
 0x243   :  { %v2229_v60 = vadd.f32 %v2213_v28, %v2190_v46 }
 0x244   :  { %v2228_v0 = vadd.f32 %v2212_v13, %v2189_v4 }
 0x245   :  { %2245 = vst.msk [vmem:[%s4441_s9 + $0x38] sm:$0xff] %vm63_vm0, %v2229_v60 }
 0x246   :  { %2244 = vst.msk [vmem:[%s4441_s9 + $0x30] sm:$0xff] %vm63_vm0, %v2228_v0 }
 0x25b   :  { %v2502_v2 = vpop.f32.mrb[24].mxu0  ;;  %v2534_v48 = vpop.f32.mrb[24].mxu1 }
 0x25c   :  { %v2192_v49 = vsub.f32 %v2502_v2, %v2534_v48  ;;  %v1947_v42 = vpop.f32.mrb[25].mxu0  ;;  %v2144_v22 = vpop.f32.mrb[25].mxu1 }
 0x25d   :  { %v2191_v40 = vsub.f32 %v1947_v42, %v2144_v22 }
 0x25e   :  { %v2231_v10 = vadd.f32 %v2215_v1, %v2192_v49 }
 0x25f   :  { %v2230_v43 = vadd.f32 %v2214_v24, %v2191_v40 }
 0x260   :  { %2247 = vst.msk [vmem:[%s4441_s9 + $0x48] sm:$0xff] %vm63_vm0, %v2231_v10 }
 0x261   :  { %2246 = vst.msk [vmem:[%s4441_s9 + $0x40] sm:$0xff] %vm63_vm0, %v2230_v43 }
 0x274   :  { %v2505_v34 = vpop.f32.mrb[26].mxu0  ;;  %v2537_v26 = vpop.f32.mrb[26].mxu1 }
 0x275   :  { %v2194_v54 = vsub.f32 %v2505_v34, %v2537_v26  ;;  %v1957_v5 = vpop.f32.mrb[27].mxu0  ;;  %v2154_v30 = vpop.f32.mrb[27].mxu1 }
 0x276   :  { %v2193_v32 = vsub.f32 %v1957_v5, %v2154_v30 }
 0x277   :  { %v2233_v55 = vadd.f32 %v2217_v58, %v2194_v54 }
 0x278   :  { %v2232_v25 = vadd.f32 %v2216_v16, %v2193_v32 }
 0x279   :  { %2249 = vst.msk [vmem:[%s4441_s9 + $0x58] sm:$0xff] %vm63_vm0, %v2233_v55 }
 0x27a   :  { %2248 = vst.msk [vmem:[%s4441_s9 + $0x50] sm:$0xff] %vm63_vm0, %v2232_v25 }
 0x28e   :  { %v2508_v35 = vpop.f32.mrb[28].mxu0 }
 0x28f   :  { %v2540_v11 = vpop.f32.mrb[28].mxu1  ;;  %v1967_v38 = vpop.f32.mrb[29].mxu0 }
 0x290   :  { %v2196_v37 = vsub.f32 %v2508_v35, %v2540_v11  ;;  %v2164_v44 = vpop.f32.mrb[29].mxu1 }
 0x291   :  { %v2195_v45 = vsub.f32 %v1967_v38, %v2164_v44 }
 0x292   :  { %v2235_v21 = vadd.f32 %v2219_v31, %v2196_v37 }
 0x293   :  { %v2234_v19 = vadd.f32 %v2218_v17, %v2195_v45 }
 0x294   :  { %2251 = vst.msk [vmem:[%s4441_s9 + $0x68] sm:$0xff] %vm63_vm0, %v2235_v21 }
 0x295   :  { %2250 = vst.msk [vmem:[%s4441_s9 + $0x60] sm:$0xff] %vm63_vm0, %v2234_v19 }
 0x2a0   :  { %v2511_v50 = vpop.f32.mrb[30].mxu0 }
 0x2a1   :  { %v1977_v39 = vpop.f32.mrb[31].mxu0 }
 0x2a3   :  { %v2543_v18 = vpop.f32.mrb[30].mxu1 }
 0x2a4   :  { %v2198_v23 = vsub.f32 %v2511_v50, %v2543_v18  ;;  %v2174_v61 = vpop.f32.mrb[31].mxu1 }
 0x2a5   :  { %v2197_v3 = vsub.f32 %v1977_v39, %v2174_v61 }
 0x2a6   :  { %v2237_v51 = vadd.f32 %v2221_v52, %v2198_v23 }
 0x2a7   :  { %v2236_v9 = vadd.f32 %v2220_v27, %v2197_v3 }
 0x2a8   :  { %2253 = vst.msk [vmem:[%s4441_s9 + $0x78] sm:$0xff] %vm63_vm0, %v2237_v51 }
 0x2a9   :  { %2252 = vst.msk [vmem:[%s4441_s9 + $0x70] sm:$0xff] %vm63_vm0, %v2236_v9 }
 0x2aa   :  { %2612 = dma.done.wait [#allocation7], 64  }
 0x2ab   :  { %2613 = vsyncadd [#allocation7], 4294967232 }
 0x2ac   :  { %2281 = vsyncpa [#allocation7], 1 }

</bundles_post_ra>
